<compile_context>
chip_gen: v7x
topology: tpu7x:2x2x1
jax: 0.10.0
libtpu: 0.0.40
codegen_flags: <defaults>
</compile_context>

<pallas_src>
import math
import functools

import numpy as np
import jax
import jax.numpy as jnp
from jax.experimental import pallas as pl
from jax.experimental.pallas import tpu as pltpu


def _down_kernel(xph_ref, mask_ref, w1_ref, b1_ref, w2_ref, b2_ref,
                 o_ref, pad1_ref, pad2_ref, col1_ref, col2_ref, *, wp, L):
    p0 = wp + 1  # halo width on each side of the packed flat spatial axis

    # ---- MaxPool2d(2): elementwise max over the 4 pre-gathered phases ------
    pooled = jnp.maximum(jnp.maximum(xph_ref[0, 0], xph_ref[0, 1]),
                         jnp.maximum(xph_ref[0, 2], xph_ref[0, 3]))  # (Cin, L)

    # (9, L) tap-validity predicate, shared by both convs.
    valid = mask_ref[...] > 0.5

    def conv3x3_bias_relu(x, pad_ref, col_ref, w_ref, b_ref):
        # x: (C_in, L).  Stage x in a padded scratch so the 9 taps are plain
        # shifted VMEM reads, gather them into the im2col scratch, then do the
        # whole channel contraction with a single MXU matmul.
        c = x.shape[0]
        pad_ref[:, p0:p0 + L] = x
        k = 0
        for dy in (-1, 0, 1):
            for dx in (-1, 0, 1):
                off = p0 + dy * wp + dx
                tap = pad_ref[:, off:off + L]            # (C_in, L) shifted read
                if not (dy == 0 and dx == 0):
                    # Select (not multiply): kills reads that crossed a row /
                    # image boundary, and never propagates halo garbage or
                    # non-finite neighbor values.
                    tap = jnp.where(valid[k:k + 1, :], tap, 0.0)
                col_ref[k * c:(k + 1) * c, :] = tap
                k += 1
        # (C_out, 9*C_in) @ (9*C_in, L) on the MXU, f32 accumulate.
        y = jnp.dot(w_ref[...], col_ref[...],
                    preferred_element_type=jnp.float32)
        return jnp.maximum(y + b_ref[...], 0.0)          # folded-BN bias + ReLU

    h = conv3x3_bias_relu(pooled, pad1_ref, col1_ref, w1_ref, b1_ref)
    out = conv3x3_bias_relu(h, pad2_ref, col2_ref, w2_ref, b2_ref)
    o_ref[0] = out.astype(o_ref.dtype)


def _fold_bn(w, gamma, beta, mean, var, eps):
    # conv(x, w) -> BN  ==  conv(x, w * s) + (beta - mean * s),  s = g/sqrt(v+eps)
    s = gamma / jnp.sqrt(var + eps)
    return w * s[:, None, None, None], beta - mean * s


def _pack_weights(w):
    # (C_out, C_in, 3, 3) -> (C_out, 9*C_in); column index = (ky*3+kx)*C_in + ci,
    # matching the tap-major im2col row layout built in the kernel.
    c_out, c_in = w.shape[0], w.shape[1]
    return jnp.transpose(w, (0, 2, 3, 1)).reshape(c_out, 9 * c_in)


def down_pallas(x, params, eps=1e-5):
    """Forward of Down: MaxPool2d(2) -> [Conv3x3 + BN + ReLU] x 2 (NCHW)."""
    n, cin, hgt, wid = x.shape
    assert hgt % 2 == 0 and wid % 2 == 0, "spatial dims must be even"
    hp, wp = hgt // 2, wid // 2
    m = hp * wp

    # Pack `ipg` images onto the lane axis so the per-step lane width is >= 128
    # (lane-dense output stores) and per-step overhead is amortized.
    ipg = 1 if m >= 128 else min(n, max(1, -(-128 // m)))
    nb = -(-n // ipg)                 # grid steps (batch chunks)
    n_pad = nb * ipg - n
    L = ipg * m                       # packed lane width per grid step
    Lp = L + 2 * (wp + 1)             # + halo so shifted tap reads stay in-bounds

    w1, w2 = params["w1"], params["w2"]
    cmid, cout = w1.shape[0], w2.shape[0]

    # Fold inference-mode BatchNorm into the conv weights / bias (plain JAX).
    w1f, b1f = _fold_bn(w1, params["bn1_gamma"], params["bn1_beta"],
                        params["bn1_mean"], params["bn1_var"], eps)
    w2f, b2f = _fold_bn(w2, params["bn2_gamma"], params["bn2_beta"],
                        params["bn2_mean"], params["bn2_var"], eps)
    w1_2d = _pack_weights(w1f)        # (cmid, 9*cin)
    w2_2d = _pack_weights(w2f)        # (cout, 9*cmid)
    b1c = b1f.reshape(cmid, 1)
    b2c = b2f.reshape(cout, 1)

    xq = x if n_pad == 0 else jnp.pad(x, ((0, n_pad), (0, 0), (0, 0), (0, 0)))

    # 2x2 pooling-phase gather + image packing (layout plumbing, no compute);
    # allow_input_fusion lets XLA fuse this into the pallas_call input DMA
    # instead of materializing an extra HBM copy of the input.
    xph = jnp.stack([xq[:, :, 0::2, 0::2], xq[:, :, 0::2, 1::2],
                     xq[:, :, 1::2, 0::2], xq[:, :, 1::2, 1::2]], axis=1)
    xph = (xph.reshape(nb, ipg, 4, cin, m)
              .transpose(0, 2, 3, 1, 4)
              .reshape(nb, 4, cin, L))

    # (9, L) tap-validity masks for the packed lane axis: a tap (dy, dx) is
    # valid at dest (row, col) iff (row+dy, col+dx) stays inside the same
    # image.  This covers row wrap-around AND cross-image bleed.
    lane = np.arange(L)
    row = (lane % m) // wp
    col = lane % wp
    masks = np.ones((9, L), np.float32)
    k = 0
    for dy in (-1, 0, 1):
        for dx in (-1, 0, 1):
            ok = ((row + dy >= 0) & (row + dy < hp) &
                  (col + dx >= 0) & (col + dx < wp))
            masks[k] = ok.astype(np.float32)
            k += 1
    masks = jnp.asarray(masks)

    kernel = functools.partial(_down_kernel, wp=wp, L=L)

    flops = (2 * n * m * 9 * (cin * cmid + cmid * cout)
             + 6 * n * m * (cin + cmid + cout))
    bytes_accessed = 4 * (nb * 4 * cin * L        # pooled-phase input read
                          + nb * cout * L         # output write
                          + 9 * L                 # tap masks
                          + 9 * (cin * cmid + cmid * cout) + cmid + cout)

    out_flat = pl.pallas_call(
        kernel,
        out_shape=jax.ShapeDtypeStruct((nb, cout, L), x.dtype),
        grid_spec=pltpu.PrefetchScalarGridSpec(
            num_scalar_prefetch=0,
            grid=(nb,),
            in_specs=[
                pl.BlockSpec((1, 4, cin, L), lambda b: (b, 0, 0, 0)),  # phases
                pl.BlockSpec((9, L), lambda b: (0, 0)),                # masks
                pl.BlockSpec((cmid, 9 * cin), lambda b: (0, 0)),       # w1 (BN folded)
                pl.BlockSpec((cmid, 1), lambda b: (0, 0)),             # b1
                pl.BlockSpec((cout, 9 * cmid), lambda b: (0, 0)),      # w2
                pl.BlockSpec((cout, 1), lambda b: (0, 0)),             # b2
            ],
            out_specs=pl.BlockSpec((1, cout, L), lambda b: (b, 0, 0)),
            scratch_shapes=[
                pltpu.VMEM((cin, Lp), jnp.float32),       # conv1 padded input
                pltpu.VMEM((cmid, Lp), jnp.float32),      # conv2 padded input
                pltpu.VMEM((9 * cin, L), jnp.float32),    # conv1 im2col taps
                pltpu.VMEM((9 * cmid, L), jnp.float32),   # conv2 im2col taps
            ],
        ),
        compiler_params=pltpu.CompilerParams(
            dimension_semantics=("parallel",),
            vmem_limit_bytes=32 * 1024 * 1024,
            allow_input_fusion=[True, False, False, False, False, False],
        ),
        cost_estimate=pl.CostEstimate(
            flops=flops, transcendentals=0, bytes_accessed=bytes_accessed),
    )(xph, masks, w1_2d, b1c, w2_2d, b2c)

    # (nb, cout, ipg*m) -> (n, cout, hp, wp): un-pack the lane-packed images
    # (tiny output; wrapper-side layout plumbing only).
    out = (out_flat.reshape(nb, cout, ipg, hp, wp)
                   .transpose(0, 2, 1, 3, 4)
                   .reshape(nb * ipg, cout, hp, wp))
    return out[:n] if n_pad else out


def init_down_params(key, in_channels, out_channels):
    """Deterministic params: conv kaiming-uniform-ish + nontrivial BN stats."""
    mid = out_channels
    k1, k2, k3 = jax.random.split(key, 3)

    def conv_init(k, co, ci):
        fan_in = ci * 9
        bound = math.sqrt(6.0 / ((1 + 5) * fan_in))  # kaiming_uniform a=sqrt(5)
        return jax.random.uniform(k, (co, ci, 3, 3), minval=-bound,
                                  maxval=bound, dtype=jnp.float32)

    def bn_init(k, c):
        kg, kb, km, kv = jax.random.split(k, 4)
        return (
            jax.random.uniform(kg, (c,), minval=0.5, maxval=1.5,
                               dtype=jnp.float32),                 # gamma
            0.1 * jax.random.normal(kb, (c,), dtype=jnp.float32),  # beta
            0.1 * jax.random.normal(km, (c,), dtype=jnp.float32),  # run mean
            jax.random.uniform(kv, (c,), minval=0.5, maxval=1.5,
                               dtype=jnp.float32),                 # run var
        )

    g1, be1, m1, v1 = bn_init(jax.random.fold_in(k3, 1), mid)
    g2, be2, m2, v2 = bn_init(jax.random.fold_in(k3, 2), out_channels)
    return dict(
        w1=conv_init(k1, mid, in_channels),
        w2=conv_init(k2, out_channels, mid),
        bn1_gamma=g1, bn1_beta=be1, bn1_mean=m1, bn1_var=v1,
        bn2_gamma=g2, bn2_beta=be2, bn2_mean=m2, bn2_var=v2,
    )


def down_reference(x, params, eps=1e-5):
    """Plain-JAX (XLA) reference: maxpool -> conv -> BN(inference) -> relu x2."""
    pooled = jax.lax.reduce_window(
        x, -jnp.inf, jax.lax.max,
        window_dimensions=(1, 1, 2, 2), window_strides=(1, 1, 2, 2),
        padding="VALID")

    def conv_bn_relu(h, w, gamma, beta, mean, var):
        y = jax.lax.conv_general_dilated(
            h, w, window_strides=(1, 1), padding=((1, 1), (1, 1)),
            dimension_numbers=("NCHW", "OIHW", "NCHW"),
            precision=jax.lax.Precision.HIGHEST)
        s = gamma / jnp.sqrt(var + eps)
        y = y * s[None, :, None, None] + (beta - mean * s)[None, :, None, None]
        return jnp.maximum(y, 0.0)

    h = conv_bn_relu(pooled, params["w1"], params["bn1_gamma"],
                     params["bn1_beta"], params["bn1_mean"], params["bn1_var"])
    return conv_bn_relu(h, params["w2"], params["bn2_gamma"],
                        params["bn2_beta"], params["bn2_mean"], params["bn2_var"])


if __name__ == "__main__":
    key = jax.random.PRNGKey(0)
    k_x, k_p = jax.random.split(key)

    N, C_IN, C_OUT, H, W = 2, 4, 8, 16, 16
    x = jax.random.normal(k_x, (N, C_IN, H, W), dtype=jnp.float32)
    params = init_down_params(k_p, C_IN, C_OUT)

    out = down_pallas(x, params)
    out = jax.block_until_ready(out)
    assert out.shape == (N, C_OUT, H // 2, W // 2)

    ref = down_reference(x, params)
    max_err = float(jnp.max(jnp.abs(out - ref)))
    assert bool(jnp.allclose(out, ref, atol=2e-3, rtol=2e-3)), max_err

    print("KERNEL_OK")
</pallas_src>

<mosaic_0001>
module attributes {stable_mosaic.version = 11 : i64} {
  func.func @_down_kernel(%arg0: i32, %arg1: memref<1x4x4x128xf32, #tpu.memory_space<vmem>>, %arg2: memref<9x128xf32, #tpu.memory_space<vmem>>, %arg3: memref<8x36xf32, #tpu.memory_space<vmem>>, %arg4: memref<8x1xf32, #tpu.memory_space<vmem>>, %arg5: memref<8x72xf32, #tpu.memory_space<vmem>>, %arg6: memref<8x1xf32, #tpu.memory_space<vmem>>, %arg7: memref<1x8x128xf32, #tpu.memory_space<vmem>>, %arg8: memref<4x146xf32, #tpu.memory_space<vmem>>, %arg9: memref<8x146xf32, #tpu.memory_space<vmem>>, %arg10: memref<36x128xf32, #tpu.memory_space<vmem>>, %arg11: memref<72x128xf32, #tpu.memory_space<vmem>>) attributes {dimension_semantics = [#tpu.dimension_semantics<parallel>], iteration_bounds = array<i64: 1>, scalar_prefetch = 0 : i64, scratch_operands = 4 : i64, tpu.core_type = #tpu.core_type<tc>, window_params = [{transform_indices = @transform_0, window_bounds = array<i64: 1, 4, 4, 128>}, {pipeline_mode = #tpu.pipeline_mode<synchronous>, transform_indices = @transform_1, window_bounds = array<i64: 9, 128>}, {pipeline_mode = #tpu.pipeline_mode<synchronous>, transform_indices = @transform_2, window_bounds = array<i64: 8, 36>}, {pipeline_mode = #tpu.pipeline_mode<synchronous>, transform_indices = @transform_3, window_bounds = array<i64: 8, 1>}, {pipeline_mode = #tpu.pipeline_mode<synchronous>, transform_indices = @transform_4, window_bounds = array<i64: 8, 72>}, {pipeline_mode = #tpu.pipeline_mode<synchronous>, transform_indices = @transform_5, window_bounds = array<i64: 8, 1>}, {transform_indices = @transform_6, window_bounds = array<i64: 1, 8, 128>}]} {
    %c0 = arith.constant 0 : index
    %c0_0 = arith.constant 0 : index
    %c0_1 = arith.constant 0 : index
    %c0_2 = arith.constant 0 : index
    %0 = vector.load %arg1[%c0, %c0_0, %c0_1, %c0_2] : memref<1x4x4x128xf32, #tpu.memory_space<vmem>>, vector<1x1x4x128xf32>
    %1 = vector.shape_cast %0 : vector<1x1x4x128xf32> to vector<4x128xf32>
    %c0_3 = arith.constant 0 : index
    %c1 = arith.constant 1 : index
    %c0_4 = arith.constant 0 : index
    %c0_5 = arith.constant 0 : index
    %2 = vector.load %arg1[%c0_3, %c1, %c0_4, %c0_5] : memref<1x4x4x128xf32, #tpu.memory_space<vmem>>, vector<1x1x4x128xf32>
    %3 = vector.shape_cast %2 : vector<1x1x4x128xf32> to vector<4x128xf32>
    %4 = arith.maximumf %1, %3 : vector<4x128xf32>
    %c0_6 = arith.constant 0 : index
    %c2 = arith.constant 2 : index
    %c0_7 = arith.constant 0 : index
    %c0_8 = arith.constant 0 : index
    %5 = vector.load %arg1[%c0_6, %c2, %c0_7, %c0_8] : memref<1x4x4x128xf32, #tpu.memory_space<vmem>>, vector<1x1x4x128xf32>
    %6 = vector.shape_cast %5 : vector<1x1x4x128xf32> to vector<4x128xf32>
    %c0_9 = arith.constant 0 : index
    %c3 = arith.constant 3 : index
    %c0_10 = arith.constant 0 : index
    %c0_11 = arith.constant 0 : index
    %7 = vector.load %arg1[%c0_9, %c3, %c0_10, %c0_11] : memref<1x4x4x128xf32, #tpu.memory_space<vmem>>, vector<1x1x4x128xf32>
    %8 = vector.shape_cast %7 : vector<1x1x4x128xf32> to vector<4x128xf32>
    %9 = arith.maximumf %6, %8 : vector<4x128xf32>
    %10 = arith.maximumf %4, %9 : vector<4x128xf32>
    %c0_12 = arith.constant 0 : index
    %c0_13 = arith.constant 0 : index
    %11 = vector.load %arg2[%c0_12, %c0_13] : memref<9x128xf32, #tpu.memory_space<vmem>>, vector<9x128xf32>
    %cst = arith.constant 5.000000e-01 : f32
    %12 = vector.broadcast %cst : f32 to vector<9x128xf32>
    %13 = arith.cmpf ogt, %11, %12 : vector<9x128xf32>
    %c0_14 = arith.constant 0 : index
    %c9 = arith.constant 9 : index
    %14 = vector.load %arg8[%c0_14, %c9] : memref<4x146xf32, #tpu.memory_space<vmem>>, vector<4x128xf32>
    tpu.vector_store %arg8[%c0_14, %c9], %10 {strides = array<i32>} : memref<4x146xf32, #tpu.memory_space<vmem>>, vector<4x128xf32>,
    %c0_15 = arith.constant 0 : index
    %c0_16 = arith.constant 0 : index
    %15 = vector.load %arg8[%c0_15, %c0_16] : memref<4x146xf32, #tpu.memory_space<vmem>>, vector<4x128xf32>
    %16 = vector.extract_strided_slice %13 {offsets = [0, 0], sizes = [1, 128], strides = [1, 1]} : vector<9x128xi1> to vector<1x128xi1>
    %cst_17 = arith.constant 0.000000e+00 : f32
    %17 = vector.shape_cast %16 : vector<1x128xi1> to vector<1x128xi1>
    %18 = vector.broadcast %17 : vector<1x128xi1> to vector<4x128xi1>
    %19 = vector.broadcast %cst_17 : f32 to vector<4x128xf32>
    %20 = arith.select %18, %15, %19 : vector<4x128xi1>, vector<4x128xf32>
    %c0_18 = arith.constant 0 : index
    %c0_19 = arith.constant 0 : index
    %21 = vector.load %arg10[%c0_18, %c0_19] : memref<36x128xf32, #tpu.memory_space<vmem>>, vector<4x128xf32>
    tpu.vector_store %arg10[%c0_18, %c0_19], %20 {strides = array<i32>} : memref<36x128xf32, #tpu.memory_space<vmem>>, vector<4x128xf32>,
    %c0_20 = arith.constant 0 : index
    %c1_21 = arith.constant 1 : index
    %22 = vector.load %arg8[%c0_20, %c1_21] : memref<4x146xf32, #tpu.memory_space<vmem>>, vector<4x128xf32>
    %23 = vector.extract_strided_slice %13 {offsets = [1, 0], sizes = [1, 128], strides = [1, 1]} : vector<9x128xi1> to vector<1x128xi1>
    %cst_22 = arith.constant 0.000000e+00 : f32
    %24 = vector.shape_cast %23 : vector<1x128xi1> to vector<1x128xi1>
    %25 = vector.broadcast %24 : vector<1x128xi1> to vector<4x128xi1>
    %26 = vector.broadcast %cst_22 : f32 to vector<4x128xf32>
    %27 = arith.select %25, %22, %26 : vector<4x128xi1>, vector<4x128xf32>
    %c4 = arith.constant 4 : index
    %c0_23 = arith.constant 0 : index
    %28 = vector.load %arg10[%c4, %c0_23] : memref<36x128xf32, #tpu.memory_space<vmem>>, vector<4x128xf32>
    tpu.vector_store %arg10[%c4, %c0_23], %27 {strides = array<i32>} : memref<36x128xf32, #tpu.memory_space<vmem>>, vector<4x128xf32>,
    %c0_24 = arith.constant 0 : index
    %c2_25 = arith.constant 2 : index
    %29 = vector.load %arg8[%c0_24, %c2_25] : memref<4x146xf32, #tpu.memory_space<vmem>>, vector<4x128xf32>
    %30 = vector.extract_strided_slice %13 {offsets = [2, 0], sizes = [1, 128], strides = [1, 1]} : vector<9x128xi1> to vector<1x128xi1>
    %cst_26 = arith.constant 0.000000e+00 : f32
    %31 = vector.shape_cast %30 : vector<1x128xi1> to vector<1x128xi1>
    %32 = vector.broadcast %31 : vector<1x128xi1> to vector<4x128xi1>
    %33 = vector.broadcast %cst_26 : f32 to vector<4x128xf32>
    %34 = arith.select %32, %29, %33 : vector<4x128xi1>, vector<4x128xf32>
    %c8 = arith.constant 8 : index
    %c0_27 = arith.constant 0 : index
    %35 = vector.load %arg10[%c8, %c0_27] : memref<36x128xf32, #tpu.memory_space<vmem>>, vector<4x128xf32>
    tpu.vector_store %arg10[%c8, %c0_27], %34 {strides = array<i32>} : memref<36x128xf32, #tpu.memory_space<vmem>>, vector<4x128xf32>,
    %c0_28 = arith.constant 0 : index
    %c8_29 = arith.constant 8 : index
    %36 = vector.load %arg8[%c0_28, %c8_29] : memref<4x146xf32, #tpu.memory_space<vmem>>, vector<4x128xf32>
    %37 = vector.extract_strided_slice %13 {offsets = [3, 0], sizes = [1, 128], strides = [1, 1]} : vector<9x128xi1> to vector<1x128xi1>
    %cst_30 = arith.constant 0.000000e+00 : f32
    %38 = vector.shape_cast %37 : vector<1x128xi1> to vector<1x128xi1>
    %39 = vector.broadcast %38 : vector<1x128xi1> to vector<4x128xi1>
    %40 = vector.broadcast %cst_30 : f32 to vector<4x128xf32>
    %41 = arith.select %39, %36, %40 : vector<4x128xi1>, vector<4x128xf32>
    %c12 = arith.constant 12 : index
    %c0_31 = arith.constant 0 : index
    %42 = vector.load %arg10[%c12, %c0_31] : memref<36x128xf32, #tpu.memory_space<vmem>>, vector<4x128xf32>
    tpu.vector_store %arg10[%c12, %c0_31], %41 {strides = array<i32>} : memref<36x128xf32, #tpu.memory_space<vmem>>, vector<4x128xf32>,
    %c0_32 = arith.constant 0 : index
    %c9_33 = arith.constant 9 : index
    %43 = vector.load %arg8[%c0_32, %c9_33] : memref<4x146xf32, #tpu.memory_space<vmem>>, vector<4x128xf32>
    %c16 = arith.constant 16 : index
    %c0_34 = arith.constant 0 : index
    %44 = vector.load %arg10[%c16, %c0_34] : memref<36x128xf32, #tpu.memory_space<vmem>>, vector<4x128xf32>
    tpu.vector_store %arg10[%c16, %c0_34], %43 {strides = array<i32>} : memref<36x128xf32, #tpu.memory_space<vmem>>, vector<4x128xf32>,
    %c0_35 = arith.constant 0 : index
    %c10 = arith.constant 10 : index
    %45 = vector.load %arg8[%c0_35, %c10] : memref<4x146xf32, #tpu.memory_space<vmem>>, vector<4x128xf32>
    %46 = vector.extract_strided_slice %13 {offsets = [5, 0], sizes = [1, 128], strides = [1, 1]} : vector<9x128xi1> to vector<1x128xi1>
    %cst_36 = arith.constant 0.000000e+00 : f32
    %47 = vector.shape_cast %46 : vector<1x128xi1> to vector<1x128xi1>
    %48 = vector.broadcast %47 : vector<1x128xi1> to vector<4x128xi1>
    %49 = vector.broadcast %cst_36 : f32 to vector<4x128xf32>
    %50 = arith.select %48, %45, %49 : vector<4x128xi1>, vector<4x128xf32>
    %c20 = arith.constant 20 : index
    %c0_37 = arith.constant 0 : index
    %51 = vector.load %arg10[%c20, %c0_37] : memref<36x128xf32, #tpu.memory_space<vmem>>, vector<4x128xf32>
    tpu.vector_store %arg10[%c20, %c0_37], %50 {strides = array<i32>} : memref<36x128xf32, #tpu.memory_space<vmem>>, vector<4x128xf32>,
    %c0_38 = arith.constant 0 : index
    %c16_39 = arith.constant 16 : index
    %52 = vector.load %arg8[%c0_38, %c16_39] : memref<4x146xf32, #tpu.memory_space<vmem>>, vector<4x128xf32>
    %53 = vector.extract_strided_slice %13 {offsets = [6, 0], sizes = [1, 128], strides = [1, 1]} : vector<9x128xi1> to vector<1x128xi1>
    %cst_40 = arith.constant 0.000000e+00 : f32
    %54 = vector.shape_cast %53 : vector<1x128xi1> to vector<1x128xi1>
    %55 = vector.broadcast %54 : vector<1x128xi1> to vector<4x128xi1>
    %56 = vector.broadcast %cst_40 : f32 to vector<4x128xf32>
    %57 = arith.select %55, %52, %56 : vector<4x128xi1>, vector<4x128xf32>
    %c24 = arith.constant 24 : index
    %c0_41 = arith.constant 0 : index
    %58 = vector.load %arg10[%c24, %c0_41] : memref<36x128xf32, #tpu.memory_space<vmem>>, vector<4x128xf32>
    tpu.vector_store %arg10[%c24, %c0_41], %57 {strides = array<i32>} : memref<36x128xf32, #tpu.memory_space<vmem>>, vector<4x128xf32>,
    %c0_42 = arith.constant 0 : index
    %c17 = arith.constant 17 : index
    %59 = vector.load %arg8[%c0_42, %c17] : memref<4x146xf32, #tpu.memory_space<vmem>>, vector<4x128xf32>
    %60 = vector.extract_strided_slice %13 {offsets = [7, 0], sizes = [1, 128], strides = [1, 1]} : vector<9x128xi1> to vector<1x128xi1>
    %cst_43 = arith.constant 0.000000e+00 : f32
    %61 = vector.shape_cast %60 : vector<1x128xi1> to vector<1x128xi1>
    %62 = vector.broadcast %61 : vector<1x128xi1> to vector<4x128xi1>
    %63 = vector.broadcast %cst_43 : f32 to vector<4x128xf32>
    %64 = arith.select %62, %59, %63 : vector<4x128xi1>, vector<4x128xf32>
    %c28 = arith.constant 28 : index
    %c0_44 = arith.constant 0 : index
    %65 = vector.load %arg10[%c28, %c0_44] : memref<36x128xf32, #tpu.memory_space<vmem>>, vector<4x128xf32>
    tpu.vector_store %arg10[%c28, %c0_44], %64 {strides = array<i32>} : memref<36x128xf32, #tpu.memory_space<vmem>>, vector<4x128xf32>,
    %c0_45 = arith.constant 0 : index
    %c18 = arith.constant 18 : index
    %66 = vector.load %arg8[%c0_45, %c18] : memref<4x146xf32, #tpu.memory_space<vmem>>, vector<4x128xf32>
    %67 = vector.extract_strided_slice %13 {offsets = [8, 0], sizes = [1, 128], strides = [1, 1]} : vector<9x128xi1> to vector<1x128xi1>
    %cst_46 = arith.constant 0.000000e+00 : f32
    %68 = vector.shape_cast %67 : vector<1x128xi1> to vector<1x128xi1>
    %69 = vector.broadcast %68 : vector<1x128xi1> to vector<4x128xi1>
    %70 = vector.broadcast %cst_46 : f32 to vector<4x128xf32>
    %71 = arith.select %69, %66, %70 : vector<4x128xi1>, vector<4x128xf32>
    %c32 = arith.constant 32 : index
    %c0_47 = arith.constant 0 : index
    %72 = vector.load %arg10[%c32, %c0_47] : memref<36x128xf32, #tpu.memory_space<vmem>>, vector<4x128xf32>
    tpu.vector_store %arg10[%c32, %c0_47], %71 {strides = array<i32>} : memref<36x128xf32, #tpu.memory_space<vmem>>, vector<4x128xf32>,
    %c0_48 = arith.constant 0 : index
    %c0_49 = arith.constant 0 : index
    %73 = vector.load %arg3[%c0_48, %c0_49] : memref<8x36xf32, #tpu.memory_space<vmem>>, vector<8x36xf32>
    %c0_50 = arith.constant 0 : index
    %c0_51 = arith.constant 0 : index
    %74 = vector.load %arg10[%c0_50, %c0_51] : memref<36x128xf32, #tpu.memory_space<vmem>>, vector<36x128xf32>
    %cst_52 = arith.constant dense<0.000000e+00> : vector<8x128xf32>
    %75 = tpu.matmul %73, %74, %cst_52 {dimension_numbers = #tpu.dot_dimension_numbers<[1], [0], [0], [1], [0, 0, 1, 1], [], []>} : vector<8x36xf32>, vector<36x128xf32>, vector<8x128xf32> -> vector<8x128xf32>
    %c0_53 = arith.constant 0 : index
    %c0_54 = arith.constant 0 : index
    %76 = vector.load %arg4[%c0_53, %c0_54] : memref<8x1xf32, #tpu.memory_space<vmem>>, vector<8x1xf32>
    %77 = vector.broadcast %76 : vector<8x1xf32> to vector<8x128xf32>
    %78 = arith.addf %75, %77 : vector<8x128xf32>
    %cst_55 = arith.constant 0.000000e+00 : f32
    %79 = vector.broadcast %cst_55 : f32 to vector<8x128xf32>
    %80 = arith.maximumf %78, %79 : vector<8x128xf32>
    %c0_56 = arith.constant 0 : index
    %c9_57 = arith.constant 9 : index
    %81 = vector.load %arg9[%c0_56, %c9_57] : memref<8x146xf32, #tpu.memory_space<vmem>>, vector<8x128xf32>
    tpu.vector_store %arg9[%c0_56, %c9_57], %80 {strides = array<i32>} : memref<8x146xf32, #tpu.memory_space<vmem>>, vector<8x128xf32>,
    %c0_58 = arith.constant 0 : index
    %c0_59 = arith.constant 0 : index
    %82 = vector.load %arg9[%c0_58, %c0_59] : memref<8x146xf32, #tpu.memory_space<vmem>>, vector<8x128xf32>
    %83 = vector.extract_strided_slice %13 {offsets = [0, 0], sizes = [1, 128], strides = [1, 1]} : vector<9x128xi1> to vector<1x128xi1>
    %cst_60 = arith.constant 0.000000e+00 : f32
    %84 = vector.shape_cast %83 : vector<1x128xi1> to vector<1x128xi1>
    %85 = vector.broadcast %84 : vector<1x128xi1> to vector<8x128xi1>
    %86 = vector.broadcast %cst_60 : f32 to vector<8x128xf32>
    %87 = arith.select %85, %82, %86 : vector<8x128xi1>, vector<8x128xf32>
    %c0_61 = arith.constant 0 : index
    %c0_62 = arith.constant 0 : index
    %88 = vector.load %arg11[%c0_61, %c0_62] : memref<72x128xf32, #tpu.memory_space<vmem>>, vector<8x128xf32>
    tpu.vector_store %arg11[%c0_61, %c0_62], %87 {strides = array<i32>} : memref<72x128xf32, #tpu.memory_space<vmem>>, vector<8x128xf32>,
    %c0_63 = arith.constant 0 : index
    %c1_64 = arith.constant 1 : index
    %89 = vector.load %arg9[%c0_63, %c1_64] : memref<8x146xf32, #tpu.memory_space<vmem>>, vector<8x128xf32>
    %90 = vector.extract_strided_slice %13 {offsets = [1, 0], sizes = [1, 128], strides = [1, 1]} : vector<9x128xi1> to vector<1x128xi1>
    %cst_65 = arith.constant 0.000000e+00 : f32
    %91 = vector.shape_cast %90 : vector<1x128xi1> to vector<1x128xi1>
    %92 = vector.broadcast %91 : vector<1x128xi1> to vector<8x128xi1>
    %93 = vector.broadcast %cst_65 : f32 to vector<8x128xf32>
    %94 = arith.select %92, %89, %93 : vector<8x128xi1>, vector<8x128xf32>
    %c8_66 = arith.constant 8 : index
    %c0_67 = arith.constant 0 : index
    %95 = vector.load %arg11[%c8_66, %c0_67] : memref<72x128xf32, #tpu.memory_space<vmem>>, vector<8x128xf32>
    tpu.vector_store %arg11[%c8_66, %c0_67], %94 {strides = array<i32>} : memref<72x128xf32, #tpu.memory_space<vmem>>, vector<8x128xf32>,
    %c0_68 = arith.constant 0 : index
    %c2_69 = arith.constant 2 : index
    %96 = vector.load %arg9[%c0_68, %c2_69] : memref<8x146xf32, #tpu.memory_space<vmem>>, vector<8x128xf32>
    %97 = vector.extract_strided_slice %13 {offsets = [2, 0], sizes = [1, 128], strides = [1, 1]} : vector<9x128xi1> to vector<1x128xi1>
    %cst_70 = arith.constant 0.000000e+00 : f32
    %98 = vector.shape_cast %97 : vector<1x128xi1> to vector<1x128xi1>
    %99 = vector.broadcast %98 : vector<1x128xi1> to vector<8x128xi1>
    %100 = vector.broadcast %cst_70 : f32 to vector<8x128xf32>
    %101 = arith.select %99, %96, %100 : vector<8x128xi1>, vector<8x128xf32>
    %c16_71 = arith.constant 16 : index
    %c0_72 = arith.constant 0 : index
    %102 = vector.load %arg11[%c16_71, %c0_72] : memref<72x128xf32, #tpu.memory_space<vmem>>, vector<8x128xf32>
    tpu.vector_store %arg11[%c16_71, %c0_72], %101 {strides = array<i32>} : memref<72x128xf32, #tpu.memory_space<vmem>>, vector<8x128xf32>,
    %c0_73 = arith.constant 0 : index
    %c8_74 = arith.constant 8 : index
    %103 = vector.load %arg9[%c0_73, %c8_74] : memref<8x146xf32, #tpu.memory_space<vmem>>, vector<8x128xf32>
    %104 = vector.extract_strided_slice %13 {offsets = [3, 0], sizes = [1, 128], strides = [1, 1]} : vector<9x128xi1> to vector<1x128xi1>
    %cst_75 = arith.constant 0.000000e+00 : f32
    %105 = vector.shape_cast %104 : vector<1x128xi1> to vector<1x128xi1>
    %106 = vector.broadcast %105 : vector<1x128xi1> to vector<8x128xi1>
    %107 = vector.broadcast %cst_75 : f32 to vector<8x128xf32>
    %108 = arith.select %106, %103, %107 : vector<8x128xi1>, vector<8x128xf32>
    %c24_76 = arith.constant 24 : index
    %c0_77 = arith.constant 0 : index
    %109 = vector.load %arg11[%c24_76, %c0_77] : memref<72x128xf32, #tpu.memory_space<vmem>>, vector<8x128xf32>
    tpu.vector_store %arg11[%c24_76, %c0_77], %108 {strides = array<i32>} : memref<72x128xf32, #tpu.memory_space<vmem>>, vector<8x128xf32>,
    %c0_78 = arith.constant 0 : index
    %c9_79 = arith.constant 9 : index
    %110 = vector.load %arg9[%c0_78, %c9_79] : memref<8x146xf32, #tpu.memory_space<vmem>>, vector<8x128xf32>
    %c32_80 = arith.constant 32 : index
    %c0_81 = arith.constant 0 : index
    %111 = vector.load %arg11[%c32_80, %c0_81] : memref<72x128xf32, #tpu.memory_space<vmem>>, vector<8x128xf32>
    tpu.vector_store %arg11[%c32_80, %c0_81], %110 {strides = array<i32>} : memref<72x128xf32, #tpu.memory_space<vmem>>, vector<8x128xf32>,
    %c0_82 = arith.constant 0 : index
    %c10_83 = arith.constant 10 : index
    %112 = vector.load %arg9[%c0_82, %c10_83] : memref<8x146xf32, #tpu.memory_space<vmem>>, vector<8x128xf32>
    %113 = vector.extract_strided_slice %13 {offsets = [5, 0], sizes = [1, 128], strides = [1, 1]} : vector<9x128xi1> to vector<1x128xi1>
    %cst_84 = arith.constant 0.000000e+00 : f32
    %114 = vector.shape_cast %113 : vector<1x128xi1> to vector<1x128xi1>
    %115 = vector.broadcast %114 : vector<1x128xi1> to vector<8x128xi1>
    %116 = vector.broadcast %cst_84 : f32 to vector<8x128xf32>
    %117 = arith.select %115, %112, %116 : vector<8x128xi1>, vector<8x128xf32>
    %c40 = arith.constant 40 : index
    %c0_85 = arith.constant 0 : index
    %118 = vector.load %arg11[%c40, %c0_85] : memref<72x128xf32, #tpu.memory_space<vmem>>, vector<8x128xf32>
    tpu.vector_store %arg11[%c40, %c0_85], %117 {strides = array<i32>} : memref<72x128xf32, #tpu.memory_space<vmem>>, vector<8x128xf32>,
    %c0_86 = arith.constant 0 : index
    %c16_87 = arith.constant 16 : index
    %119 = vector.load %arg9[%c0_86, %c16_87] : memref<8x146xf32, #tpu.memory_space<vmem>>, vector<8x128xf32>
    %120 = vector.extract_strided_slice %13 {offsets = [6, 0], sizes = [1, 128], strides = [1, 1]} : vector<9x128xi1> to vector<1x128xi1>
    %cst_88 = arith.constant 0.000000e+00 : f32
    %121 = vector.shape_cast %120 : vector<1x128xi1> to vector<1x128xi1>
    %122 = vector.broadcast %121 : vector<1x128xi1> to vector<8x128xi1>
    %123 = vector.broadcast %cst_88 : f32 to vector<8x128xf32>
    %124 = arith.select %122, %119, %123 : vector<8x128xi1>, vector<8x128xf32>
    %c48 = arith.constant 48 : index
    %c0_89 = arith.constant 0 : index
    %125 = vector.load %arg11[%c48, %c0_89] : memref<72x128xf32, #tpu.memory_space<vmem>>, vector<8x128xf32>
    tpu.vector_store %arg11[%c48, %c0_89], %124 {strides = array<i32>} : memref<72x128xf32, #tpu.memory_space<vmem>>, vector<8x128xf32>,
    %c0_90 = arith.constant 0 : index
    %c17_91 = arith.constant 17 : index
    %126 = vector.load %arg9[%c0_90, %c17_91] : memref<8x146xf32, #tpu.memory_space<vmem>>, vector<8x128xf32>
    %127 = vector.extract_strided_slice %13 {offsets = [7, 0], sizes = [1, 128], strides = [1, 1]} : vector<9x128xi1> to vector<1x128xi1>
    %cst_92 = arith.constant 0.000000e+00 : f32
    %128 = vector.shape_cast %127 : vector<1x128xi1> to vector<1x128xi1>
    %129 = vector.broadcast %128 : vector<1x128xi1> to vector<8x128xi1>
    %130 = vector.broadcast %cst_92 : f32 to vector<8x128xf32>
    %131 = arith.select %129, %126, %130 : vector<8x128xi1>, vector<8x128xf32>
    %c56 = arith.constant 56 : index
    %c0_93 = arith.constant 0 : index
    %132 = vector.load %arg11[%c56, %c0_93] : memref<72x128xf32, #tpu.memory_space<vmem>>, vector<8x128xf32>
    tpu.vector_store %arg11[%c56, %c0_93], %131 {strides = array<i32>} : memref<72x128xf32, #tpu.memory_space<vmem>>, vector<8x128xf32>,
    %c0_94 = arith.constant 0 : index
    %c18_95 = arith.constant 18 : index
    %133 = vector.load %arg9[%c0_94, %c18_95] : memref<8x146xf32, #tpu.memory_space<vmem>>, vector<8x128xf32>
    %134 = vector.extract_strided_slice %13 {offsets = [8, 0], sizes = [1, 128], strides = [1, 1]} : vector<9x128xi1> to vector<1x128xi1>
    %cst_96 = arith.constant 0.000000e+00 : f32
    %135 = vector.shape_cast %134 : vector<1x128xi1> to vector<1x128xi1>
    %136 = vector.broadcast %135 : vector<1x128xi1> to vector<8x128xi1>
    %137 = vector.broadcast %cst_96 : f32 to vector<8x128xf32>
    %138 = arith.select %136, %133, %137 : vector<8x128xi1>, vector<8x128xf32>
    %c64 = arith.constant 64 : index
    %c0_97 = arith.constant 0 : index
    %139 = vector.load %arg11[%c64, %c0_97] : memref<72x128xf32, #tpu.memory_space<vmem>>, vector<8x128xf32>
    tpu.vector_store %arg11[%c64, %c0_97], %138 {strides = array<i32>} : memref<72x128xf32, #tpu.memory_space<vmem>>, vector<8x128xf32>,
    %c0_98 = arith.constant 0 : index
    %c0_99 = arith.constant 0 : index
    %140 = vector.load %arg5[%c0_98, %c0_99] : memref<8x72xf32, #tpu.memory_space<vmem>>, vector<8x72xf32>
    %c0_100 = arith.constant 0 : index
    %c0_101 = arith.constant 0 : index
    %141 = vector.load %arg11[%c0_100, %c0_101] : memref<72x128xf32, #tpu.memory_space<vmem>>, vector<72x128xf32>
    %cst_102 = arith.constant dense<0.000000e+00> : vector<8x128xf32>
    %142 = tpu.matmul %140, %141, %cst_102 {dimension_numbers = #tpu.dot_dimension_numbers<[1], [0], [0], [1], [0, 0, 1, 1], [], []>} : vector<8x72xf32>, vector<72x128xf32>, vector<8x128xf32> -> vector<8x128xf32>
    %c0_103 = arith.constant 0 : index
    %c0_104 = arith.constant 0 : index
    %143 = vector.load %arg6[%c0_103, %c0_104] : memref<8x1xf32, #tpu.memory_space<vmem>>, vector<8x1xf32>
    %144 = vector.broadcast %143 : vector<8x1xf32> to vector<8x128xf32>
    %145 = arith.addf %142, %144 : vector<8x128xf32>
    %cst_105 = arith.constant 0.000000e+00 : f32
    %146 = vector.broadcast %cst_105 : f32 to vector<8x128xf32>
    %147 = arith.maximumf %145, %146 : vector<8x128xf32>
    %c0_106 = arith.constant 0 : index
    %c0_107 = arith.constant 0 : index
    %c0_108 = arith.constant 0 : index
    %148 = vector.load %arg7[%c0_106, %c0_107, %c0_108] : memref<1x8x128xf32, #tpu.memory_space<vmem>>, vector<1x8x128xf32>
    %149 = vector.shape_cast %148 : vector<1x8x128xf32> to vector<8x128xf32>
    %150 = vector.shape_cast %147 : vector<8x128xf32> to vector<1x8x128xf32>
    tpu.vector_store %arg7[%c0_106, %c0_107, %c0_108], %150 {strides = array<i32>} : memref<1x8x128xf32, #tpu.memory_space<vmem>>, vector<1x8x128xf32>,
    return
  }
  func.func @transform_0(%arg0: i32) -> (i32, i32, i32, i32) {
    %c0_i32 = arith.constant 0 : i32
    %c0_i32_0 = arith.constant 0 : i32
    %c0_i32_1 = arith.constant 0 : i32
    %c0_i32_2 = arith.constant 0 : i32
    return %arg0, %c0_i32, %c0_i32_0, %c0_i32_1 : i32, i32, i32, i32
  }
  func.func @transform_1(%arg0: i32) -> (i32, i32) {
    %c0_i32 = arith.constant 0 : i32
    %c0_i32_0 = arith.constant 0 : i32
    %c0_i32_1 = arith.constant 0 : i32
    return %c0_i32, %c0_i32_0 : i32, i32
  }
  func.func @transform_2(%arg0: i32) -> (i32, i32) {
    %c0_i32 = arith.constant 0 : i32
    %c0_i32_0 = arith.constant 0 : i32
    %c0_i32_1 = arith.constant 0 : i32
    return %c0_i32, %c0_i32_0 : i32, i32
  }
  func.func @transform_3(%arg0: i32) -> (i32, i32) {
    %c0_i32 = arith.constant 0 : i32
    %c0_i32_0 = arith.constant 0 : i32
    %c0_i32_1 = arith.constant 0 : i32
    return %c0_i32, %c0_i32_0 : i32, i32
  }
  func.func @transform_4(%arg0: i32) -> (i32, i32) {
    %c0_i32 = arith.constant 0 : i32
    %c0_i32_0 = arith.constant 0 : i32
    %c0_i32_1 = arith.constant 0 : i32
    return %c0_i32, %c0_i32_0 : i32, i32
  }
  func.func @transform_5(%arg0: i32) -> (i32, i32) {
    %c0_i32 = arith.constant 0 : i32
    %c0_i32_0 = arith.constant 0 : i32
    %c0_i32_1 = arith.constant 0 : i32
    return %c0_i32, %c0_i32_0 : i32, i32
  }
  func.func @transform_6(%arg0: i32) -> (i32, i32, i32) {
    %c0_i32 = arith.constant 0 : i32
    %c0_i32_0 = arith.constant 0 : i32
    %c0_i32_1 = arith.constant 0 : i32
    return %arg0, %c0_i32, %c0_i32_0 : i32, i32, i32
  }
}

</mosaic_0001>

<bundles_post_ra>
// kernel: tpu_custom_call.1
= control target key start
LH: loop header
LB: loop body
LE: loop exit
PB: predicated region body
PF: predicated region fallthrough
CT: control target
= control target key end

     0   :  { %11 = vsyncpa [#allocation7], 0  ;;  %s2448_s0 = inlined_call_operand.vmem [shape: f32[1,4,4,128], index: 0, kind: input, shape index: {}]   ;;  %s2449_s1 = inlined_call_operand.hbm [shape: f32[9,128], index: 1, kind: input, shape index: {}]   ;;  %s2450_s2 = inlined_call_operand.vmem [shape: f32[8,36], index: 2, kind: input, shape index: {}]   ;;  %s2451_s3 = inlined_call_operand.vmem [shape: f32[8,1], index: 3, kind: input, shape index: {}]   ;;  %s2452_s4 = inlined_call_operand.vmem [shape: f32[8,72], index: 4, kind: input, shape index: {}]   ;;  %s2453_s5 = inlined_call_operand.vmem [shape: f32[8,1], index: 5, kind: input, shape index: {}]   ;;  %s2454_s6 = inlined_call_operand.hbm [shape: f32[1,8,128], index: 6, kind: output, shape index: {}]  }
   0x1   :  { %12 = vsyncpa [#allocation8], 0  ;;  %s1568_s21 = smov [#allocation6]   ;;  %s1520_s25 = scalar_lea.hbm %s2449_s1, 256 }
   0x2   :  { %s20_s22 = sshll.u32 %s1568_s21, 4  ;;  %p1521_p0 = scmp.ne.s32.totalorder %s2449_s1, %s1520_s25  ;;  %s21_s22 = int_to_ptr.vmem [resolvable:$true] %s20_s22 }
   0x3   :  { %p1524_p1 = scmp.lt.u32.totalorder %s1520_s25, %s2449_s1 }
   0x5   :  { %p1526_p2 = pnand %p1524_p1, %p1521_p0 }
   0x7   :  { %1529 = shalt.err (!%p1526_p2)
}
   0x8   :  { %s1530_s30 = scalar_lea.vmem %s21_s22, 256  ;;  %p1535_p4 = scmp.lt.s32.totalorder %s21_s22, %s21_s22 }
   0x9   :  { %p1531_p3 = scmp.ne.s32.totalorder %s21_s22, %s1530_s30  ;;  %p1536_p5 = scmp.lt.s32.totalorder %s1530_s30, %s1530_s30 }
   0xb   :  { %p1537_p6 = por %p1536_p5, %p1535_p4 }
   0xd   :  { %p1538_p7 = pnand %p1537_p6, %p1531_p3 }
   0xf   :  { %1541 = shalt.err (!%p1538_p7)
}
  0x10   :  { %s1569_s7 = smov 128   ;;  %s1570_s8 = smov 8  }
  0x11   :  { %26 = dma.hbm_to_vmem [thread:$0]  %s2449_s1, 256, %s21_s22, [#allocation7], %s1569_s7, %s1569_s7, %s1570_s8  }
  0x12   :  { %1564 = dma.done.wait [#allocation7], 256  }
  0x13   :  { %1565 = vsyncadd [#allocation7], 4294967040  ;;  %v38_v0 = vld [vmem:[%s2448_s0] sm:$0xf]  ;;  %v1426_v1 = vld [vmem:[%s2448_s0 + $0x4] sm:$0xf] }
  0x14   :  { %v1427_v2 = vld [vmem:[%s2448_s0 + $0x8] sm:$0xf]  ;;  %v41_v3 = vmax.f32 %v38_v0, %v1426_v1  ;;  %v1428_v4 = vld [vmem:[%s2448_s0 + $0xc] sm:$0xf]  ;;  %s1571_s1 = smov 9   ;;  %vm59_vm0 = vcmask 1043528  }
  0x15   :  { %v46_v5 = vmax.f32 %v1427_v2, %v1428_v4  ;;  %vm60_vm1 = vcmask 72708   ;;  %vm56_vm2 = vcmask 72704   ;;  %v1646_v10 = vld [vmem:[#allocation6] sm:$0xff]  ;;  %s1572_s0 = smov 126   ;;  %s1573_s19 = smov 127   ;;  %vm83_vm5 = vcmask 1041409  }
  0x16   :  { %vm61_vm3 = vmor %vm60_vm1, %vm59_vm0  ;;  %vm50_vm4 = vcmp.gt.f32.partialorder %v1646_v10, 0.5  ;;  %s1574_s20 = smov 120   ;;  %s1575_s21 = smov 119   ;;  %vm86_vm6 = vcmask 1042434   ;;  %vm89_vm7 = vcmask 1043459   ;;  %v1580_v39 = vmov 0.0|0.0  }
  0x17   :  { %v47_v6 = vmax.f32 %v41_v3, %v46_v5  ;;  %s1576_s22 = smov 110   ;;  %s1577_s23 = smov 118   ;;  %1482 = vmatprep.subr.bf16.mxu0 %v1580_v39  ;;  %1488 = vmatprep.subr.bf16.mxu1 %v1580_v39  ;;  %vm1581_vm8 = vmmov 0   ;;  %v1582_v41 = vmov 0.0   ;;  %v475_v42 = vld [vmem:[%s2451_s3] sm:$0xff]  ;;  %v1583_v45 = vmov 0  }
  0x18   :  { %s1578_s24 = smov 112   ;;  %s1579_s25 = smov 111   ;;  %1458 = vmatprep.mubr.msk.f32.mxu0 %vm1581_vm8, %v1582_v41  ;;  %1479 = vmatprep.mubr.msk.f32.mxu1 %vm1581_vm8, %v1582_v41  ;;  %vm253_vm9 = vcmask 973824   ;;  %vm118_vm10 = vcmask 1039360   ;;  %vm169_vm11 = vcmask 1031168   ;;  %vm140_vm12 = vcmask 1044484  }
  0x19   :  { %53 = vrot.lane.b32.xlu0 %v47_v6, %s1571_s1  ;;  %1517 = vset.pattern.permute.xlu1 %v1583_v45  ;;  %vm220_vm13 = vcmask 982016   ;;  %vm191_vm14 = vcmask 1045509   ;;  %vm242_vm15 = vcmask 1046534   ;;  %vm2457_vm0 = vcmask 908288   ;;  %s1584_s7 = smov [#allocation9]  }
  0x1a   :  { %1518 = vset.pattern.permute.xlu0 %v1583_v45  ;;  %vm2456_vm1 = vcmask 916480   ;;  %vm304_vm8 = vcmask 1047559   ;;  %s1417_s8 = sshll.u32 %s1584_s7, 4  ;;  %s1418_s8 = int_to_ptr.vmem [resolvable:$true] %s1417_s8 }
  0x1b   :  { %s1542_s9 = scalar_lea.vmem %s1418_s8, 128  ;;  %p1547_p9 = scmp.lt.s32.totalorder %s1418_s8, %s1418_s8 }
  0x1c   :  { %p1543_p8 = scmp.ne.s32.totalorder %s1418_s8, %s1542_s9  ;;  %p1548_p10 = scmp.lt.s32.totalorder %s1542_s9, %s1542_s9 }
  0x1e   :  { %p1549_p11 = por %p1548_p10, %p1547_p9 }
  0x20   :  { %p1550_p12 = pnand %p1549_p11, %p1543_p8 }
  0x8b   :  { %v54_v7 = vpop.permute.xlu0 %53 }
  0x8c   :  { %v55_v8 = vrot.slane %v54_v7, 4 }
  0x8e   :  { %v57_v9 = vsel %vm56_vm2, %v55_v8, %v54_v7 }
  0x8f   :  { %62 = vst.msk [vmem:[#allocation2] sm:$0xff] %vm61_vm3, %v57_v9  ;;  %vm2455_vm3 = vcmask 965632  }
  0x96   :  { %v63_v11 = vld [vmem:[#allocation2] sm:$0xf] }
  0x97   :  { %v1648_v12 = vld [vmem:[#allocation2] sm:$0xff]  ;;  %v67_v13 = vrot.slane %v63_v11, 1  ;;  %v68_v16 = vrot.slane %v63_v11, 2  ;;  %v69_v17 = vrot.slane %v63_v11, 3  ;;  %v74_v19 = vsel %vm50_vm4, %v63_v11, 0.0 }
  0x98   :  { %161 = vrot.lane.b32.xlu1 %v1648_v12, %s1572_s0  ;;  %106 = vrot.lane.b32.xlu0 %v1648_v12, %s1573_s19  ;;  %v1659_v15 = vcombine.high %v1648_v12, %v1648_v12  ;;  %v149_v27 = vrot.slane %v1648_v12, 7  ;;  %v200_v28 = vrot.slane %v1648_v12, 6  ;;  %v98_v29 = vrot.slane %v1648_v12, 1 }
  0x99   :  { %v75_v14 = vsel %vm50_vm4, %v67_v13, 0.0  ;;  %v76_v20 = vsel %vm50_vm4, %v68_v16, 0.0  ;;  %v77_v21 = vsel %vm50_vm4, %v69_v17, 0.0  ;;  %v100_v32 = vrot.slane %v1648_v12, 2 }
  0x9a   :  { %v82_v18 = vrot.slane %v75_v14, 7  ;;  %v85_v23 = vrot.slane %v76_v20, 6  ;;  %v88_v24 = vrot.slane %v77_v21, 5  ;;  %v150_v30 = vrot.slane %v1659_v15, 7 }
  0x9b   :  { %v201_v31 = vrot.slane %v1659_v15, 6  ;;  %v99_v33 = vrot.slane %v1659_v15, 1  ;;  %v198_v34 = vrot.slane %v1648_v12, 5  ;;  %v101_v35 = vrot.slane %v1659_v15, 2 }
  0x9c   :  { %216 = vrot.lane.b32.xlu1 %v1648_v12, %s1574_s20  ;;  %163 = vrot.lane.b32.xlu0 %v1659_v15, %s1572_s0  ;;  %v84_v22 = vsel %vm83_vm5, %v82_v18, %v74_v19  ;;  %v262_v36 = vrot.slane %v1648_v12, 4  ;;  %v371_v37 = vrot.slane %v1648_v12, 3  ;;  %v199_v38 = vrot.slane %v1659_v15, 5 }
  0x9d   :  { %v87_v25 = vsel %vm86_vm6, %v85_v23, %v84_v22  ;;  %v372_v40 = vrot.slane %v1659_v15, 3 }
  0x9e   :  { %v90_v26 = vsel %vm89_vm7, %v88_v24, %v87_v25 }
  0x9f   :  { %92 = vst [vmem:[#allocation4] sm:$0xf] %v90_v26 }
  0xa0   :  { %249 = vrot.lane.b32.xlu1 %v1648_v12, %s1575_s21  ;;  %218 = vrot.lane.b32.xlu0 %v1659_v15, %s1574_s20 }
  0xa4   :  { %428 = vrot.lane.b32.xlu1 %v1648_v12, %s1576_s22  ;;  %274 = vrot.lane.b32.xlu0 %v1659_v15, %s1577_s23 }
  0xa8   :  { %332 = vrot.lane.b32.xlu0 %v1659_v15, %s1578_s24  ;;  %108 = vrot.lane.b32.xlu1 %v1659_v15, %s1573_s19 }
  0xac   :  { %389 = vrot.lane.b32.xlu0 %v1659_v15, %s1579_s25  ;;  %157 = vrot.lane.b32.xlu1 %v149_v27, %s1572_s0 }
  0xb0   :  { %251 = vrot.lane.b32.xlu0 %v1659_v15, %s1575_s21  ;;  %208 = vrot.lane.b32.xlu1 %v200_v28, %s1574_s20 }
  0xb4   :  { %430 = vrot.lane.b32.xlu0 %v1659_v15, %s1576_s22  ;;  %110 = vrot.lane.b32.xlu1 %v98_v29, %s1573_s19 }
  0xb8   :  { %159 = vrot.lane.b32.xlu0 %v150_v30, %s1572_s0  ;;  %212 = vrot.lane.b32.xlu1 %v149_v27, %s1574_s20 }
  0xbc   :  { %210 = vrot.lane.b32.xlu0 %v201_v31, %s1574_s20  ;;  %102 = vrot.lane.b32.xlu1 %v149_v27, %s1573_s19 }
  0xc0   :  { %114 = vrot.lane.b32.xlu1 %v100_v32, %s1573_s19  ;;  %112 = vrot.lane.b32.xlu0 %v99_v33, %s1573_s19 }
  0xc4   :  { %153 = vrot.lane.b32.xlu1 %v200_v28, %s1572_s0  ;;  %214 = vrot.lane.b32.xlu0 %v150_v30, %s1574_s20 }
  0xc8   :  { %165 = vrot.lane.b32.xlu1 %v98_v29, %s1572_s0  ;;  %104 = vrot.lane.b32.xlu0 %v150_v30, %s1573_s19 }
  0xcc   :  { %204 = vrot.lane.b32.xlu1 %v198_v34, %s1574_s20  ;;  %116 = vrot.lane.b32.xlu0 %v101_v35, %s1573_s19 }
  0xd0   :  { %272 = vrot.lane.b32.xlu1 %v262_v36, %s1577_s23  ;;  %155 = vrot.lane.b32.xlu0 %v201_v31, %s1572_s0 }
  0xd4   :  { %379 = vrot.lane.b32.xlu1 %v100_v32, %s1579_s25  ;;  %167 = vrot.lane.b32.xlu0 %v99_v33, %s1572_s0 }
  0xd8   :  { %383 = vrot.lane.b32.xlu1 %v371_v37, %s1579_s25  ;;  %206 = vrot.lane.b32.xlu0 %v199_v38, %s1574_s20 }
  0xdc   :  { %276 = vrot.lane.b32.xlu1 %v198_v34, %s1577_s23  ;;  %381 = vrot.lane.b32.xlu0 %v101_v35, %s1579_s25 }
  0xe0   :  { %326 = vrot.lane.b32.xlu1 %v371_v37, %s1578_s24  ;;  %385 = vrot.lane.b32.xlu0 %v372_v40, %s1579_s25 }
  0xe4   :  { %330 = vrot.lane.b32.xlu1 %v262_v36, %s1578_s24  ;;  %278 = vrot.lane.b32.xlu0 %v199_v38, %s1577_s23 }
  0xe8   :  { %334 = vrot.lane.b32.xlu1 %v198_v34, %s1578_s24  ;;  %328 = vrot.lane.b32.xlu0 %v372_v40, %s1578_s24 }
  0xec   :  { %387 = vrot.lane.b32.xlu1 %v262_v36, %s1579_s25  ;;  %336 = vrot.lane.b32.xlu0 %v199_v38, %s1578_s24 }
  0xf0   :  { %268 = vrot.lane.b32.xlu1 %v371_v37, %s1577_s23  ;;  %270 = vrot.lane.b32.xlu0 %v372_v40, %s1577_s23 }
  0xf4   :  { %280 = vrot.lane.b32.xlu1 %v200_v28, %s1577_s23  ;;  %282 = vrot.lane.b32.xlu0 %v201_v31, %s1577_s23 }
  0xf8   :  { %322 = vrot.lane.b32.xlu1 %v100_v32, %s1578_s24  ;;  %324 = vrot.lane.b32.xlu0 %v101_v35, %s1578_s24 }
  0xfc   :  { %375 = vrot.lane.b32.xlu1 %v98_v29, %s1579_s25  ;;  %377 = vrot.lane.b32.xlu0 %v99_v33, %s1579_s25 }
 0x100   :  { %432 = vrot.lane.b32.xlu1 %v98_v29, %s1576_s22  ;;  %434 = vrot.lane.b32.xlu0 %v99_v33, %s1576_s22 }
 0x104   :  { %436 = vrot.lane.b32.xlu1 %v100_v32, %s1576_s22  ;;  %438 = vrot.lane.b32.xlu0 %v101_v35, %s1576_s22 }
 0x108   :  { %440 = vrot.lane.b32.xlu1 %v371_v37, %s1576_s22  ;;  %442 = vrot.lane.b32.xlu0 %v372_v40, %s1576_s22 }
 0x10a   :  { %v162_v43 = vpop.permute.xlu1 %161  ;;  %v107_v44 = vpop.permute.xlu0 %106 }
 0x10c   :  { %478 = vperm.xlu1 %1517, %v475_v42  }
 0x10e   :  { %v217_v46 = vpop.permute.xlu1 %216  ;;  %v164_v47 = vpop.permute.xlu0 %163 }
 0x10f   :  { %v172_v23 = vsel %vm169_vm11, %v162_v43, %v164_v47 }
 0x110   :  { %v180_v31 = vsel %vm50_vm4, %v172_v23, 0.0 }
 0x111   :  { %v188_v42 = vrot.slane %v180_v31, 6 }
 0x112   :  { %v250_v48 = vpop.permute.xlu1 %249  ;;  %v219_v49 = vpop.permute.xlu0 %218 }
 0x113   :  { %v224_v37 = vsel %vm220_vm13, %v217_v46, %v219_v49 }
 0x116   :  { %v1757_v50 = vpop.permute.xlu1 %428  ;;  %v1759_v51 = vpop.permute.xlu0 %274 }
 0x11a   :  { %v1761_v52 = vpop.permute.xlu0 %332  ;;  %v109_v53 = vpop.permute.xlu1 %108 }
 0x11b   :  { %v120_v5 = vsel %vm118_vm10, %v107_v44, %v109_v53 }
 0x11c   :  { %v128_v6 = vsel %vm50_vm4, %v120_v5, 0.0 }
 0x11d   :  { %v135_v13 = vrot.slane %v128_v6, 7 }
 0x11e   :  { %v1763_v54 = vpop.permute.xlu0 %389  ;;  %v158_v55 = vpop.permute.xlu1 %157 }
 0x122   :  { %v252_v56 = vpop.permute.xlu0 %251  ;;  %v209_v57 = vpop.permute.xlu1 %208 }
 0x123   :  { %v254_v58 = vsel %vm253_vm9, %v250_v48, %v252_v56  ;;  %v232_v48 = vsel %vm50_vm4, %v224_v37, 0.0 }
 0x124   :  { %256 = vst [vmem:[#allocation4 + $0x10] sm:$0xf] %v254_v58 }
 0x126   :  { %v1766_v59 = vpop.permute.xlu0 %430  ;;  %v111_v60 = vpop.permute.xlu1 %110 }
 0x12a   :  { %v160_v61 = vpop.permute.xlu0 %159  ;;  %v213_v62 = vpop.permute.xlu1 %212 }
 0x12b   :  { %v171_v17 = vsel %vm169_vm11, %v158_v55, %v160_v61  ;;  %v241_v61 = vrot.slane %v232_v48, 5 }
 0x12c   :  { %v179_v24 = vsel %vm50_vm4, %v171_v17, 0.0 }
 0x12d   :  { %v186_v32 = vrot.slane %v179_v24, 7 }
 0x12e   :  { %v211_v63 = vpop.permute.xlu0 %210  ;;  %v103_v0 = vpop.permute.xlu1 %102 }
 0x12f   :  { %v222_v33 = vsel %vm220_vm13, %v209_v57, %v211_v63 }
 0x130   :  { %v230_v43 = vsel %vm50_vm4, %v222_v33, 0.0 }
 0x131   :  { %v237_v55 = vrot.slane %v230_v43, 7 }
 0x132   :  { %v115_v1 = vpop.permute.xlu1 %114  ;;  %v113_v2 = vpop.permute.xlu0 %112 }
 0x133   :  { %v121_v7 = vsel %vm118_vm10, %v111_v60, %v113_v2 }
 0x134   :  { %v129_v14 = vsel %vm50_vm4, %v121_v7, 0.0 }
 0x135   :  { %v137_v20 = vrot.slane %v129_v14, 6 }
 0x136   :  { %v154_v3 = vpop.permute.xlu1 %153  ;;  %v215_v4 = vpop.permute.xlu0 %214 }
 0x137   :  { %v223_v34 = vsel %vm220_vm13, %v213_v62, %v215_v4 }
 0x138   :  { %v231_v45 = vsel %vm50_vm4, %v223_v34, 0.0 }
 0x139   :  { %v239_v58 = vrot.slane %v231_v45, 6 }
 0x13a   :  { %v166_v8 = vpop.permute.xlu1 %165  ;;  %v105_v9 = vpop.permute.xlu0 %104 }
 0x13b   :  { %v119_v11 = vsel %vm118_vm10, %v103_v0, %v105_v9 }
 0x13c   :  { %v127_v12 = vsel %vm50_vm4, %v119_v11, 0.0 }
 0x13d   :  { %v136_v18 = vsel %vm86_vm6, %v135_v13, %v127_v12 }
 0x13e   :  { %v205_v15 = vpop.permute.xlu1 %204  ;;  %v117_v16 = vpop.permute.xlu0 %116  ;;  %v138_v25 = vsel %vm89_vm7, %v137_v20, %v136_v18 }
 0x13f   :  { %v122_v19 = vsel %vm118_vm10, %v115_v1, %v117_v16 }
 0x140   :  { %v130_v21 = vsel %vm50_vm4, %v122_v19, 0.0 }
 0x141   :  { %v139_v22 = vrot.slane %v130_v21, 5 }
 0x142   :  { %v273_v26 = vpop.permute.xlu1 %272  ;;  %v156_v27 = vpop.permute.xlu0 %155 }
 0x143   :  { %v141_v28 = vsel %vm140_vm12, %v139_v22, %v138_v25  ;;  %v170_v29 = vsel %vm169_vm11, %v154_v3, %v156_v27  ;;  %v286_v17 = vsel %vm2455_vm3, %v273_v26, %v1759_v51 }
 0x144   :  { %143 = vst [vmem:[#allocation4 + $0x3] sm:$0x1e] %v141_v28  ;;  %v178_v30 = vsel %vm50_vm4, %v170_v29, 0.0  ;;  %v294_v25 = vsel %vm50_vm4, %v286_v17, 0.0 }
 0x145   :  { %v187_v38 = vsel %vm89_vm7, %v186_v32, %v178_v30  ;;  %v301_v34 = vrot.slane %v294_v25, 7 }
 0x146   :  { %v380_v35 = vpop.permute.xlu1 %379  ;;  %v168_v36 = vpop.permute.xlu0 %167  ;;  %v189_v46 = vsel %vm140_vm12, %v188_v42, %v187_v38 }
 0x147   :  { %v173_v40 = vsel %vm169_vm11, %v166_v8, %v168_v36 }
 0x148   :  { %v181_v44 = vsel %vm50_vm4, %v173_v40, 0.0 }
 0x149   :  { %v190_v47 = vrot.slane %v181_v44, 5 }
 0x14a   :  { %v384_v49 = vpop.permute.xlu1 %383  ;;  %v207_v53 = vpop.permute.xlu0 %206 }
 0x14b   :  { %v192_v56 = vsel %vm191_vm14, %v190_v47, %v189_v46  ;;  %v221_v57 = vsel %vm220_vm13, %v205_v15, %v207_v53  ;;  %v470_v7 = vld [vmem:[#allocation4] sm:$0xff] }
 0x14c   :  { %194 = vst [vmem:[#allocation4 + $0x6] sm:$0x3c] %v192_v56  ;;  %v229_v60 = vsel %vm50_vm4, %v221_v57, 0.0 }
 0x14d   :  { %v238_v62 = vsel %vm140_vm12, %v237_v55, %v229_v60 }
 0x14e   :  { %v240_v63 = vsel %vm191_vm14, %v239_v58, %v238_v62  ;;  %v277_v0 = vpop.permute.xlu1 %276  ;;  %v382_v1 = vpop.permute.xlu0 %381 }
 0x14f   :  { %v243_v2 = vsel %vm242_vm15, %v241_v61, %v240_v63  ;;  %v393_v12 = vsel %vm2457_vm0, %v380_v35, %v382_v1 }
 0x150   :  { %245 = vst [vmem:[#allocation4 + $0x9] sm:$0x78] %v243_v2  ;;  %v401_v18 = vsel %vm50_vm4, %v393_v12, 0.0  ;;  %v1859_v2 = vld [vmem:[#allocation6 + $0x8] sm:$0x1] }
 0x151   :  { %v408_v51 = vrot.slane %v401_v18, 7 }
 0x152   :  { %v327_v3 = vpop.permute.xlu1 %326  ;;  %v386_v4 = vpop.permute.xlu0 %385 }
 0x153   :  { %v394_v9 = vsel %vm2457_vm0, %v384_v49, %v386_v4 }
 0x154   :  { %v402_v15 = vsel %vm50_vm4, %v394_v9, 0.0 }
 0x155   :  { %v409_v19 = vrot.slane %v402_v15, 6 }
 0x156   :  { %v331_v5 = vpop.permute.xlu1 %330  ;;  %v279_v6 = vpop.permute.xlu0 %278 }
 0x157   :  { %v471_v8 = vld [vmem:[#allocation4 + $0x8] sm:$0xff]  ;;  %v341_v16 = vsel %vm2456_vm1, %v331_v5, %v1761_v52  ;;  %v287_v21 = vsel %vm2455_vm3, %v277_v0, %v279_v6 }
 0x158   :  { %v1483_v11 = vpack.c.bf16 %v471_v8, %v470_v7  ;;  %v349_v20 = vsel %vm50_vm4, %v341_v16, 0.0  ;;  %v295_v29 = vsel %vm50_vm4, %v287_v21, 0.0 }
 0x159   :  { %v357_v28 = vrot.slane %v349_v20, 6  ;;  %v303_v38 = vrot.slane %v295_v29, 6 }
 0x15a   :  { %v335_v13 = vpop.permute.xlu1 %334  ;;  %v329_v14 = vpop.permute.xlu0 %328  ;;  %1484 = vmatpush3.bf16.msra.mxu0 %v1483_v11 }
 0x15b   :  { %1485 = vmatprep.subr.bf16.mxu0 %v1580_v39  ;;  %v340_v42 = vsel %vm2456_vm1, %v327_v3, %v329_v14 }
 0x15c   :  { %v348_v46 = vsel %vm50_vm4, %v340_v42, 0.0 }
 0x15d   :  { %v355_v57 = vrot.slane %v348_v46, 7 }
 0x15e   :  { %v388_v22 = vpop.permute.xlu1 %387  ;;  %v337_v23 = vpop.permute.xlu0 %336 }
 0x15f   :  { %v395_v24 = vsel %vm2457_vm0, %v388_v22, %v1763_v54  ;;  %v342_v52 = vsel %vm2456_vm1, %v335_v13, %v337_v23  ;;  %v410_v54 = vsel %vm83_vm5, %v409_v19, %v408_v51 }
 0x160   :  { %v403_v26 = vsel %vm50_vm4, %v395_v24, 0.0  ;;  %v350_v27 = vsel %vm50_vm4, %v342_v52, 0.0  ;;  %v469_v52 = vld [vmem:[%s2450_s2] sm:$0xff] }
 0x161   :  { %v411_v30 = vrot.slane %v403_v26, 5  ;;  %v358_v31 = vrot.slane %v350_v27, 5 }
 0x162   :  { %v269_v32 = vpop.permute.xlu1 %268  ;;  %v271_v33 = vpop.permute.xlu0 %270 }
 0x163   :  { %v412_v35 = vsel %vm86_vm6, %v411_v30, %v410_v54  ;;  %v359_v36 = vsel %vm83_vm5, %v358_v31, %v357_v28  ;;  %v285_v37 = vsel %vm2455_vm3, %v269_v32, %v271_v33 }
 0x164   :  { %416 = vst [vmem:[#allocation4 + $0x1d] sm:$0x7] %v412_v35  ;;  %363 = vst [vmem:[#allocation4 + $0x1a] sm:$0x3] %v359_v36  ;;  %v293_v40 = vsel %vm50_vm4, %v285_v37, 0.0 }
 0x165   :  { %v302_v43 = vsel %vm242_vm15, %v301_v34, %v293_v40 }
 0x166   :  { %v305_v44 = vsel %vm304_vm8, %v303_v38, %v302_v43  ;;  %v281_v45 = vpop.permute.xlu1 %280  ;;  %v283_v47 = vpop.permute.xlu0 %282 }
 0x167   :  { %309 = vst [vmem:[#allocation4 + $0xf] sm:$0xe0] %v305_v44  ;;  %v288_v48 = vsel %vm2455_vm3, %v281_v45, %v283_v47  ;;  %vm2458_vm3 = vcmask 900096  }
 0x168   :  { %v296_v49 = vsel %vm50_vm4, %v288_v48, 0.0  ;;  %v445_v14 = vsel %vm2458_vm3, %v1757_v50, %v1766_v59 }
 0x169   :  { %v306_v53 = vrot.slane %v296_v49, 5 }
 0x16a   :  { %v323_v55 = vpop.permute.xlu1 %322  ;;  %v325_v56 = vpop.permute.xlu0 %324 }
 0x16b   :  { %310 = vst [vmem:[#allocation4 + $0x17] sm:$0x1] %v306_v53  ;;  %v339_v58 = vsel %vm2456_vm1, %v323_v55, %v325_v56  ;;  %vm2459_vm1 = vcmp.gt.f32.partialorder %v1859_v2, 0.5 }
 0x16c   :  { %v347_v60 = vsel %vm50_vm4, %v339_v58, 0.0  ;;  %v453_v21 = vsel %vm2459_vm1, %v445_v14, 0.0 }
 0x16d   :  { %v356_v61 = vsel %vm304_vm8, %v355_v57, %v347_v60 }
 0x16e   :  { %362 = vst [vmem:[#allocation4 + $0x12] sm:$0xc0] %v356_v61  ;;  %v376_v62 = vpop.permute.xlu1 %375  ;;  %v378_v63 = vpop.permute.xlu0 %377 }
 0x16f   :  { %v392_v0 = vsel %vm2457_vm0, %v376_v62, %v378_v63  ;;  %vm485_vm0 = vcmask 1043456  }
 0x170   :  { %v400_v1 = vsel %vm50_vm4, %v392_v0, 0.0 }
 0x171   :  { %415 = vst [vmem:[#allocation4 + $0x15] sm:$0x80] %v400_v1 }
 0x172   :  { %v433_v3 = vpop.permute.xlu1 %432  ;;  %v435_v4 = vpop.permute.xlu0 %434  ;;  %v472_v12 = vld [vmem:[#allocation4 + $0x10] sm:$0xff] }
 0x173   :  { %v446_v5 = vsel %vm2458_vm3, %v433_v3, %v435_v4 }
 0x174   :  { %v454_v6 = vsel %vm2459_vm1, %v446_v5, 0.0 }
 0x175   :  { %v461_v15 = vrot.slane %v454_v6, 7 }
 0x176   :  { %v437_v7 = vpop.permute.xlu1 %436  ;;  %v439_v8 = vpop.permute.xlu0 %438 }
 0x177   :  { %v447_v9 = vsel %vm2458_vm3, %v437_v7, %v439_v8  ;;  %v462_v23 = vsel %vm83_vm5, %v461_v15, %v453_v21 }
 0x178   :  { %v455_v11 = vsel %vm2459_vm1, %v447_v9, 0.0  ;;  %v473_v13 = vld [vmem:[#allocation4 + $0x18] sm:$0xff] }
 0x179   :  { %v1486_v16 = vpack.c.bf16 %v473_v13, %v472_v12  ;;  %v463_v17 = vrot.slane %v455_v11, 6 }
 0x17a   :  { %v441_v18 = vpop.permute.xlu1 %440  ;;  %v443_v19 = vpop.permute.xlu0 %442 }
 0x17b   :  { %v448_v20 = vsel %vm2458_vm3, %v441_v18, %v443_v19  ;;  %1487 = vmatpush3.bf16.msra.mxu0 %v1486_v16  ;;  %v464_v50 = vsel %vm86_vm6, %v463_v17, %v462_v23  ;;  %vm481_vm3 = vcmask 293888  }
 0x17c   :  { %v456_v22 = vsel %vm2459_vm1, %v448_v20, 0.0  ;;  %1456 = vmatprep.subr.mxu0 %v1582_v41  ;;  %vm564_vm1 = vcmask 1047624  }
 0x17d   :  { %v465_v24 = vrot.slane %v456_v22, 5 }
 0x17f   :  { %v466_v59 = vsel %vm89_vm7, %v465_v24, %v464_v50 }
 0x180   :  { %468 = vst [vmem:[#allocation4 + $0x20] sm:$0xf] %v466_v59 }
 0x187   :  { %v474_v25 = vld [vmem:[#allocation4 + $0x20] sm:$0xf] }
 0x188   :  { %1457 = vmatpush3.msk.msra.mxu0 %vm485_vm0, %v474_v25 }
 0x189   :  { %1459 = vmatmul.mubr.msk.f32.vlgmr.msra.gmra.mrb[0].mxu0 %vm481_vm3, %v469_v52 }
 0x18b   :  { %v479_v51 = vpop.permute.xlu1 %478 }
 0x25c   :  { %v555_v26 = vpop.f32.mrb[0].mxu0 }
 0x25d   :  { %v556_v27 = vadd.f32 %v555_v26, %v479_v51  ;;  %v1460_v28 = vpop.f32.mrb[1].mxu0 }
 0x25f   :  { %v559_v29 = vmax.f32 %v556_v27, 0.0 }
 0x261   :  { %561 = vrot.lane.b32.xlu0 %v559_v29, %s1571_s1 }
 0x2d3   :  { %v562_v30 = vpop.permute.xlu0 %561 }
 0x2d4   :  { %565 = vst.msk [vmem:[#allocation3] sm:$0xff] %vm564_vm1, %v562_v30 }
 0x2d5   :  { %566 = vst.msk [vmem:[#allocation3 + $0x8] sm:$0xff] %vm56_vm2, %v562_v30  ;;  %vm2460_vm2 = vcmask 965632  }
 0x2d6   :  { %vm2465_vm0 = vmmov %vm2460_vm2 }
 0x2d7   :  { %vm2466_vm1 = vmmov %vm2465_vm0 }
 0x2d8   :  { %vm2467_vm3 = vmmov %vm2465_vm0 }
 0x2db   :  { %v567_v31 = vld [vmem:[#allocation3] sm:$0xff] }
 0x2dc   :  { %v1885_v54 = vld [vmem:[#allocation3 + $0x8] sm:$0xff]  ;;  %v1887_v32 = vrot.slane %v567_v31, 1  ;;  %v1889_v33 = vrot.slane %v567_v31, 2  ;;  %638 = vrot.lane.b32.xlu1 %v567_v31, %s1573_s19  ;;  %v1894_v34 = vrot.slane %v567_v31, 3  ;;  %v1899_v36 = vrot.slane %v567_v31, 4 }
 0x2dd   :  { %640 = vrot.lane.b32.xlu0 %v1885_v54, %s1573_s19  ;;  %v1901_v37 = vrot.slane %v567_v31, 5  ;;  %v1903_v38 = vrot.slane %v567_v31, 6  ;;  %v1908_v40 = vrot.slane %v567_v31, 7  ;;  %v584_v48 = vsel %vm50_vm4, %v567_v31, 0.0 }
 0x2de   :  { %v585_v35 = vsel %vm50_vm4, %v1887_v32, 0.0  ;;  %v586_v42 = vsel %vm50_vm4, %v1889_v33, 0.0  ;;  %v587_v43 = vsel %vm50_vm4, %v1894_v34, 0.0  ;;  %v588_v44 = vsel %vm50_vm4, %v1899_v36, 0.0 }
 0x2df   :  { %v600_v45 = vrot.slane %v585_v35, 7  ;;  %v602_v47 = vrot.slane %v586_v42, 6  ;;  %v589_v46 = vsel %vm50_vm4, %v1901_v37, 0.0  ;;  %v590_v49 = vsel %vm50_vm4, %v1903_v38, 0.0 }
 0x2e0   :  { %741 = vrot.lane.b32.xlu1 %v567_v31, %s1572_s0  ;;  %v604_v55 = vrot.slane %v587_v43, 5  ;;  %v591_v56 = vsel %vm50_vm4, %v1908_v40, 0.0  ;;  %v606_v58 = vrot.slane %v588_v44, 4  ;;  %v608_v61 = vrot.slane %v589_v46, 3 }
 0x2e1   :  { %743 = vrot.lane.b32.xlu0 %v1885_v54, %s1572_s0  ;;  %v601_v53 = vsel %vm83_vm5, %v600_v45, %v584_v48  ;;  %v610_v63 = vrot.slane %v590_v49, 2  ;;  %v612_v1 = vrot.slane %v591_v56, 1  ;;  %v1958_v5 = vrot.slane %v1885_v54, 1 }
 0x2e2   :  { %v603_v57 = vsel %vm86_vm6, %v602_v47, %v601_v53  ;;  %v1965_v6 = vrot.slane %v1885_v54, 7  ;;  %v1972_v7 = vrot.slane %v1885_v54, 2  ;;  %v1979_v8 = vrot.slane %v1885_v54, 3 }
 0x2e3   :  { %v605_v60 = vsel %vm89_vm7, %v604_v55, %v603_v57  ;;  %v1986_v9 = vrot.slane %v1885_v54, 4  ;;  %v1993_v11 = vrot.slane %v1885_v54, 5  ;;  %v2004_v12 = vrot.slane %v1885_v54, 6 }
 0x2e4   :  { %844 = vrot.lane.b32.xlu1 %v567_v31, %s1574_s20  ;;  %v607_v62 = vsel %vm140_vm12, %v606_v58, %v605_v60 }
 0x2e5   :  { %846 = vrot.lane.b32.xlu0 %v1885_v54, %s1574_s20  ;;  %v609_v0 = vsel %vm191_vm14, %v608_v61, %v607_v62 }
 0x2e6   :  { %v611_v3 = vsel %vm242_vm15, %v610_v63, %v609_v0 }
 0x2e7   :  { %v1943_v4 = vsel %vm304_vm8, %v612_v1, %v611_v3 }
 0x2e8   :  { %962 = vrot.lane.b32.xlu1 %v567_v31, %s1577_s23 }
 0x2e9   :  { %964 = vrot.lane.b32.xlu0 %v1885_v54, %s1577_s23 }
 0x2ec   :  { %1065 = vrot.lane.b32.xlu1 %v567_v31, %s1578_s24 }
 0x2ed   :  { %1067 = vrot.lane.b32.xlu0 %v1885_v54, %s1578_s24 }
 0x2f0   :  { %917 = vrot.lane.b32.xlu1 %v567_v31, %s1575_s21 }
 0x2f1   :  { %919 = vrot.lane.b32.xlu0 %v1885_v54, %s1575_s21 }
 0x2f4   :  { %1168 = vrot.lane.b32.xlu1 %v567_v31, %s1579_s25 }
 0x2f5   :  { %1170 = vrot.lane.b32.xlu0 %v1885_v54, %s1579_s25 }
 0x2f8   :  { %1239 = vrot.lane.b32.xlu1 %v567_v31, %s1576_s22 }
 0x2f9   :  { %1241 = vrot.lane.b32.xlu0 %v1885_v54, %s1576_s22 }
 0x2fc   :  { %642 = vrot.lane.b32.xlu1 %v1887_v32, %s1573_s19 }
 0x2fd   :  { %644 = vrot.lane.b32.xlu0 %v1958_v5, %s1573_s19 }
 0x300   :  { %634 = vrot.lane.b32.xlu1 %v1908_v40, %s1573_s19 }
 0x301   :  { %636 = vrot.lane.b32.xlu0 %v1965_v6, %s1573_s19 }
 0x304   :  { %646 = vrot.lane.b32.xlu1 %v1889_v33, %s1573_s19 }
 0x305   :  { %648 = vrot.lane.b32.xlu0 %v1972_v7, %s1573_s19 }
 0x308   :  { %650 = vrot.lane.b32.xlu1 %v1894_v34, %s1573_s19 }
 0x309   :  { %652 = vrot.lane.b32.xlu0 %v1979_v8, %s1573_s19 }
 0x30c   :  { %654 = vrot.lane.b32.xlu1 %v1899_v36, %s1573_s19 }
 0x30d   :  { %656 = vrot.lane.b32.xlu0 %v1986_v9, %s1573_s19 }
 0x310   :  { %658 = vrot.lane.b32.xlu1 %v1901_v37, %s1573_s19 }
 0x311   :  { %660 = vrot.lane.b32.xlu0 %v1993_v11, %s1573_s19 }
 0x314   :  { %737 = vrot.lane.b32.xlu1 %v1908_v40, %s1572_s0 }
 0x315   :  { %739 = vrot.lane.b32.xlu0 %v1965_v6, %s1572_s0 }
 0x318   :  { %662 = vrot.lane.b32.xlu1 %v1903_v38, %s1573_s19 }
 0x319   :  { %664 = vrot.lane.b32.xlu0 %v2004_v12, %s1573_s19 }
 0x31c   :  { %836 = vrot.lane.b32.xlu1 %v1903_v38, %s1574_s20 }
 0x31d   :  { %838 = vrot.lane.b32.xlu0 %v2004_v12, %s1574_s20 }
 0x320   :  { %733 = vrot.lane.b32.xlu1 %v1903_v38, %s1572_s0 }
 0x321   :  { %735 = vrot.lane.b32.xlu0 %v2004_v12, %s1572_s0 }
 0x324   :  { %745 = vrot.lane.b32.xlu1 %v1887_v32, %s1572_s0 }
 0x325   :  { %747 = vrot.lane.b32.xlu0 %v1958_v5, %s1572_s0 }
 0x328   :  { %840 = vrot.lane.b32.xlu1 %v1908_v40, %s1574_s20 }
 0x329   :  { %842 = vrot.lane.b32.xlu0 %v1965_v6, %s1574_s20 }
 0x32c   :  { %749 = vrot.lane.b32.xlu1 %v1889_v33, %s1572_s0 }
 0x32d   :  { %751 = vrot.lane.b32.xlu0 %v1972_v7, %s1572_s0 }
 0x330   :  { %832 = vrot.lane.b32.xlu1 %v1901_v37, %s1574_s20 }
 0x331   :  { %834 = vrot.lane.b32.xlu0 %v1993_v11, %s1574_s20 }
 0x334   :  { %852 = vrot.lane.b32.xlu1 %v1889_v33, %s1574_s20 }
 0x335   :  { %854 = vrot.lane.b32.xlu0 %v1972_v7, %s1574_s20 }
 0x338   :  { %856 = vrot.lane.b32.xlu1 %v1894_v34, %s1574_s20 }
 0x339   :  { %858 = vrot.lane.b32.xlu0 %v1979_v8, %s1574_s20 }
 0x33c   :  { %753 = vrot.lane.b32.xlu1 %v1894_v34, %s1572_s0 }
 0x33d   :  { %755 = vrot.lane.b32.xlu0 %v1979_v8, %s1572_s0 }
 0x340   :  { %757 = vrot.lane.b32.xlu1 %v1899_v36, %s1572_s0 }
 0x341   :  { %759 = vrot.lane.b32.xlu0 %v1986_v9, %s1572_s0 }
 0x344   :  { %761 = vrot.lane.b32.xlu1 %v1901_v37, %s1572_s0 }
 0x345   :  { %763 = vrot.lane.b32.xlu0 %v1993_v11, %s1572_s0 }
 0x348   :  { %848 = vrot.lane.b32.xlu1 %v1887_v32, %s1574_s20 }
 0x349   :  { %850 = vrot.lane.b32.xlu0 %v1958_v5, %s1574_s20 }
 0x34c   :  { %860 = vrot.lane.b32.xlu1 %v1899_v36, %s1574_s20 }
 0x34d   :  { %862 = vrot.lane.b32.xlu0 %v1986_v9, %s1574_s20 }
 0x34e   :  { %v639_v14 = vpop.permute.xlu1 %638 }
 0x34f   :  { %v641_v13 = vpop.permute.xlu0 %640 }
 0x350   :  { %954 = vrot.lane.b32.xlu1 %v1903_v38, %s1577_s23  ;;  %v667_v54 = vsel %vm118_vm10, %v639_v14, %v641_v13 }
 0x351   :  { %956 = vrot.lane.b32.xlu0 %v2004_v12, %s1577_s23  ;;  %v683_v45 = vsel %vm50_vm4, %v667_v54, 0.0 }
 0x352   :  { %v2068_v16 = vpop.permute.xlu1 %741  ;;  %v698_v53 = vrot.slane %v683_v45, 7 }
 0x353   :  { %v2066_v15 = vpop.permute.xlu0 %743 }
 0x354   :  { %958 = vrot.lane.b32.xlu1 %v1908_v40, %s1577_s23 }
 0x355   :  { %960 = vrot.lane.b32.xlu0 %v1965_v6, %s1577_s23 }
 0x356   :  { %v2076_v18 = vpop.permute.xlu1 %844 }
 0x357   :  { %v2074_v17 = vpop.permute.xlu0 %846 }
 0x358   :  { %946 = vrot.lane.b32.xlu1 %v1899_v36, %s1577_s23 }
 0x359   :  { %948 = vrot.lane.b32.xlu0 %v1986_v9, %s1577_s23 }
 0x35a   :  { %v2084_v20 = vpop.permute.xlu1 %962 }
 0x35b   :  { %v2082_v19 = vpop.permute.xlu0 %964 }
 0x35c   :  { %966 = vrot.lane.b32.xlu1 %v1887_v32, %s1577_s23 }
 0x35d   :  { %968 = vrot.lane.b32.xlu0 %v1958_v5, %s1577_s23 }
 0x35e   :  { %v2092_v22 = vpop.permute.xlu1 %1065 }
 0x35f   :  { %v2090_v21 = vpop.permute.xlu0 %1067 }
 0x360   :  { %1144 = vrot.lane.b32.xlu1 %v1889_v33, %s1579_s25 }
 0x361   :  { %1146 = vrot.lane.b32.xlu0 %v1972_v7, %s1579_s25 }
 0x362   :  { %v918_v24 = vpop.permute.xlu1 %917 }
 0x363   :  { %v920_v23 = vpop.permute.xlu0 %919 }
 0x364   :  { %v2099_v50 = vsel %vm253_vm9, %v918_v24, %v920_v23  ;;  %1148 = vrot.lane.b32.xlu1 %v1894_v34, %s1579_s25  ;;  %vm2461_vm9 = vmmov %vm2460_vm2 }
 0x365   :  { %1150 = vrot.lane.b32.xlu0 %v1979_v8, %s1579_s25 }
 0x366   :  { %v2107_v52 = vpop.permute.xlu1 %1168 }
 0x367   :  { %v2105_v59 = vpop.permute.xlu0 %1170 }
 0x368   :  { %950 = vrot.lane.b32.xlu1 %v1901_v37, %s1577_s23 }
 0x369   :  { %952 = vrot.lane.b32.xlu0 %v1993_v11, %s1577_s23 }
 0x36a   :  { %v2115_v51 = vpop.permute.xlu1 %1239 }
 0x36b   :  { %v2113_v25 = vpop.permute.xlu0 %1241 }
 0x36c   :  { %970 = vrot.lane.b32.xlu1 %v1889_v33, %s1577_s23 }
 0x36d   :  { %972 = vrot.lane.b32.xlu0 %v1972_v7, %s1577_s23 }
 0x36e   :  { %v643_v27 = vpop.permute.xlu1 %642 }
 0x36f   :  { %v645_v26 = vpop.permute.xlu0 %644 }
 0x370   :  { %1049 = vrot.lane.b32.xlu1 %v1899_v36, %s1578_s24  ;;  %v668_v47 = vsel %vm118_vm10, %v643_v27, %v645_v26 }
 0x371   :  { %1051 = vrot.lane.b32.xlu0 %v1986_v9, %s1578_s24  ;;  %v684_v55 = vsel %vm50_vm4, %v668_v47, 0.0 }
 0x372   :  { %v635_v29 = vpop.permute.xlu1 %634  ;;  %v700_v0 = vrot.slane %v684_v55, 6 }
 0x373   :  { %v637_v28 = vpop.permute.xlu0 %636 }
 0x374   :  { %1053 = vrot.lane.b32.xlu1 %v1901_v37, %s1578_s24  ;;  %v666_v35 = vsel %vm118_vm10, %v635_v29, %v637_v28 }
 0x375   :  { %1055 = vrot.lane.b32.xlu0 %v1993_v11, %s1578_s24  ;;  %v682_v46 = vsel %vm50_vm4, %v666_v35, 0.0 }
 0x376   :  { %v647_v31 = vpop.permute.xlu1 %646  ;;  %v699_v61 = vsel %vm86_vm6, %v698_v53, %v682_v46 }
 0x377   :  { %v649_v30 = vpop.permute.xlu0 %648  ;;  %v701_v23 = vsel %vm89_vm7, %v700_v0, %v699_v61 }
 0x378   :  { %1152 = vrot.lane.b32.xlu1 %v1899_v36, %s1579_s25  ;;  %v669_v42 = vsel %vm118_vm10, %v647_v31, %v649_v30 }
 0x379   :  { %1154 = vrot.lane.b32.xlu0 %v1986_v9, %s1579_s25  ;;  %v685_v49 = vsel %vm50_vm4, %v669_v42, 0.0 }
 0x37a   :  { %v651_v44 = vpop.permute.xlu1 %650  ;;  %v702_v62 = vrot.slane %v685_v49, 5 }
 0x37b   :  { %v653_v43 = vpop.permute.xlu0 %652 }
 0x37c   :  { %v670_v48 = vsel %vm118_vm10, %v651_v44, %v653_v43  ;;  %942 = vrot.lane.b32.xlu1 %v1894_v34, %s1577_s23  ;;  %v703_v26 = vsel %vm140_vm12, %v702_v62, %v701_v23 }
 0x37d   :  { %944 = vrot.lane.b32.xlu0 %v1979_v8, %s1577_s23  ;;  %v686_v56 = vsel %vm50_vm4, %v670_v48, 0.0 }
 0x37e   :  { %v655_v58 = vpop.permute.xlu1 %654  ;;  %v704_v1 = vrot.slane %v686_v56, 4 }
 0x37f   :  { %v657_v57 = vpop.permute.xlu0 %656 }
 0x380   :  { %v671_v60 = vsel %vm118_vm10, %v655_v58, %v657_v57  ;;  %1057 = vrot.lane.b32.xlu1 %v1903_v38, %s1578_s24  ;;  %v705_v28 = vsel %vm191_vm14, %v704_v1, %v703_v26 }
 0x381   :  { %v687_v63 = vsel %vm50_vm4, %v671_v60, 0.0  ;;  %1059 = vrot.lane.b32.xlu0 %v2004_v12, %s1578_s24 }
 0x382   :  { %v706_v3 = vrot.slane %v687_v63, 3  ;;  %v659_v14 = vpop.permute.xlu1 %658 }
 0x383   :  { %v661_v13 = vpop.permute.xlu0 %660 }
 0x384   :  { %v672_v24 = vsel %vm118_vm10, %v659_v14, %v661_v13  ;;  %1156 = vrot.lane.b32.xlu1 %v1901_v37, %s1579_s25  ;;  %v707_v30 = vsel %vm242_vm15, %v706_v3, %v705_v28 }
 0x385   :  { %v688_v27 = vsel %vm50_vm4, %v672_v24, 0.0  ;;  %1158 = vrot.lane.b32.xlu0 %v1993_v11, %s1579_s25  ;;  %v767_v24 = vsel %vm169_vm11, %v2068_v16, %v2066_v15 }
 0x386   :  { %v708_v29 = vrot.slane %v688_v27, 2  ;;  %v738_v54 = vpop.permute.xlu1 %737  ;;  %v783_v15 = vsel %vm50_vm4, %v767_v24, 0.0 }
 0x387   :  { %v740_v31 = vpop.permute.xlu0 %739 }
 0x388   :  { %v709_v35 = vsel %vm304_vm8, %v708_v29, %v707_v30  ;;  %1061 = vrot.lane.b32.xlu1 %v1908_v40, %s1578_s24  ;;  %v766_v1 = vsel %vm169_vm11, %v738_v54, %v740_v31  ;;  %v799_v31 = vrot.slane %v783_v15, 6  ;;  %v1329_v15 = vld [vmem:[%s2453_s5] sm:$0xff] }
 0x389   :  { %713 = vst [vmem:[#allocation5 + $0x7] sm:$0xfe] %v709_v35  ;;  %1063 = vrot.lane.b32.xlu0 %v1965_v6, %s1578_s24  ;;  %v782_v26 = vsel %vm50_vm4, %v766_v1, 0.0 }
 0x38a   :  { %v663_v43 = vpop.permute.xlu1 %662  ;;  %v797_v16 = vrot.slane %v782_v26, 7 }
 0x38b   :  { %v665_v42 = vpop.permute.xlu0 %664 }
 0x38c   :  { %v673_v44 = vsel %vm118_vm10, %v663_v43, %v665_v42  ;;  %1160 = vrot.lane.b32.xlu1 %v1903_v38, %s1579_s25  ;;  %vm2462_vm10 = vmmov %vm2460_vm2 }
 0x38d   :  { %v689_v45 = vsel %vm50_vm4, %v673_v44, 0.0  ;;  %1162 = vrot.lane.b32.xlu0 %v2004_v12, %s1579_s25 }
 0x38e   :  { %v710_v47 = vrot.slane %v689_v45, 1  ;;  %v837_v46 = vpop.permute.xlu1 %836 }
 0x38f   :  { %v839_v48 = vpop.permute.xlu0 %838 }
 0x390   :  { %714 = vst [vmem:[#allocation5 + $0xf] sm:$0x1] %v710_v47  ;;  %1164 = vrot.lane.b32.xlu1 %v1908_v40, %s1579_s25  ;;  %v865_v44 = vsel %vm220_vm13, %v837_v46, %v839_v48 }
 0x391   :  { %1166 = vrot.lane.b32.xlu0 %v1965_v6, %s1579_s25  ;;  %v881_v46 = vsel %vm50_vm4, %v865_v44, 0.0 }
 0x392   :  { %v734_v53 = vpop.permute.xlu1 %733 }
 0x393   :  { %v736_v49 = vpop.permute.xlu0 %735 }
 0x394   :  { %1045 = vrot.lane.b32.xlu1 %v1894_v34, %s1578_s24  ;;  %v765_v14 = vsel %vm169_vm11, %v734_v53, %v736_v49 }
 0x395   :  { %1047 = vrot.lane.b32.xlu0 %v1979_v8, %s1578_s24 }
 0x396   :  { %v746_v56 = vpop.permute.xlu1 %745 }
 0x397   :  { %v748_v55 = vpop.permute.xlu0 %747  ;;  %v1321_v57 = vld [vmem:[#allocation5 + $0x8] sm:$0xff] }
 0x398   :  { %v1489_v58 = vpack.c.bf16 %v1321_v57, %v1943_v4  ;;  %1069 = vrot.lane.b32.xlu1 %v1887_v32, %s1578_s24  ;;  %v768_v23 = vsel %vm169_vm11, %v746_v56, %v748_v55 }
 0x399   :  { %1071 = vrot.lane.b32.xlu0 %v1958_v5, %s1578_s24  ;;  %v784_v27 = vsel %vm50_vm4, %v768_v23, 0.0 }
 0x39a   :  { %1490 = vmatpush3.bf16.msra.mxu1 %v1489_v58  ;;  %v841_v61 = vpop.permute.xlu1 %840  ;;  %v867_v58 = vsel %vm220_vm13, %v2076_v18, %v2074_v17 }
 0x39b   :  { %v843_v60 = vpop.permute.xlu0 %842  ;;  %1491 = vmatprep.subr.bf16.mxu1 %v1580_v39  ;;  %v883_v17 = vsel %vm50_vm4, %v867_v58, 0.0 }
 0x39c   :  { %1243 = vrot.lane.b32.xlu1 %v1887_v32, %s1576_s22  ;;  %v866_v56 = vsel %vm220_vm13, %v841_v61, %v843_v60 }
 0x39d   :  { %1245 = vrot.lane.b32.xlu0 %v1958_v5, %s1576_s22  ;;  %v882_v60 = vsel %vm50_vm4, %v866_v56, 0.0 }
 0x39e   :  { %v750_v63 = vpop.permute.xlu1 %749  ;;  %v898_v18 = vrot.slane %v882_v60, 6 }
 0x39f   :  { %v752_v62 = vpop.permute.xlu0 %751 }
 0x3a0   :  { %1247 = vrot.lane.b32.xlu1 %v1889_v33, %s1576_s22 }
 0x3a1   :  { %1249 = vrot.lane.b32.xlu0 %v1972_v7, %s1576_s22 }
 0x3a2   :  { %v833_v0 = vpop.permute.xlu1 %832 }
 0x3a3   :  { %v835_v4 = vpop.permute.xlu0 %834 }
 0x3a4   :  { %1041 = vrot.lane.b32.xlu1 %v1889_v33, %s1578_s24  ;;  %v781_v33 = vsel %vm50_vm4, %v765_v14, 0.0  ;;  %v864_v53 = vsel %vm220_vm13, %v833_v0, %v835_v4 }
 0x3a5   :  { %1043 = vrot.lane.b32.xlu0 %v1972_v7, %s1578_s24  ;;  %v769_v7 = vsel %vm169_vm11, %v750_v63, %v752_v62  ;;  %v896_v62 = vrot.slane %v881_v46, 7 }
 0x3a6   :  { %v853_v13 = vpop.permute.xlu1 %852  ;;  %v785_v30 = vsel %vm50_vm4, %v769_v7, 0.0 }
 0x3a7   :  { %v855_v3 = vpop.permute.xlu0 %854  ;;  %v803_v54 = vrot.slane %v785_v30, 4 }
 0x3a8   :  { %1251 = vrot.lane.b32.xlu1 %v1894_v34, %s1576_s22  ;;  %v798_v34 = vsel %vm89_vm7, %v797_v16, %v781_v33  ;;  %v869_v24 = vsel %vm220_vm13, %v853_v13, %v855_v3 }
 0x3a9   :  { %1253 = vrot.lane.b32.xlu0 %v1979_v8, %s1576_s22  ;;  %v801_v8 = vrot.slane %v784_v27, 5  ;;  %v800_v45 = vsel %vm140_vm12, %v799_v31, %v798_v34  ;;  %v885_v3 = vsel %vm50_vm4, %v869_v24, 0.0 }
 0x3aa   :  { %v857_v29 = vpop.permute.xlu1 %856 }
 0x3ab   :  { %v859_v28 = vpop.permute.xlu0 %858 }
 0x3ac   :  { %1140 = vrot.lane.b32.xlu1 %v1887_v32, %s1579_s25  ;;  %v802_v32 = vsel %vm191_vm14, %v801_v8, %v800_v45  ;;  %v870_v0 = vsel %vm220_vm13, %v857_v29, %v859_v28 }
 0x3ad   :  { %1142 = vrot.lane.b32.xlu0 %v1958_v5, %s1579_s25  ;;  %v804_v49 = vsel %vm242_vm15, %v803_v54, %v802_v32  ;;  %v886_v27 = vsel %vm50_vm4, %v870_v0, 0.0  ;;  %v904_v54 = vrot.slane %v885_v3, 3 }
 0x3ae   :  { %v754_v42 = vpop.permute.xlu1 %753  ;;  %v905_v30 = vrot.slane %v886_v27, 2 }
 0x3af   :  { %v756_v35 = vpop.permute.xlu0 %755 }
 0x3b0   :  { %v770_v43 = vsel %vm169_vm11, %v754_v42, %v756_v35  ;;  %1255 = vrot.lane.b32.xlu1 %v1899_v36, %s1576_s22  ;;  %v880_v36 = vsel %vm50_vm4, %v864_v53, 0.0  ;;  %v906_v42 = vsel %vm83_vm5, %v905_v30, %v904_v54 }
 0x3b1   :  { %v786_v47 = vsel %vm50_vm4, %v770_v43, 0.0  ;;  %1257 = vrot.lane.b32.xlu0 %v1986_v9, %s1576_s22 }
 0x3b2   :  { %v805_v5 = vrot.slane %v786_v47, 3  ;;  %v758_v48 = vpop.permute.xlu1 %757 }
 0x3b3   :  { %v760_v55 = vpop.permute.xlu0 %759 }
 0x3b4   :  { %v806_v57 = vsel %vm304_vm8, %v805_v5, %v804_v49  ;;  %v771_v9 = vsel %vm169_vm11, %v758_v48, %v760_v55  ;;  %1259 = vrot.lane.b32.xlu1 %v1901_v37, %s1576_s22  ;;  %v897_v37 = vsel %vm140_vm12, %v896_v62, %v880_v36 }
 0x3b5   :  { %812 = vst [vmem:[#allocation5 + $0xe] sm:$0xfc] %v806_v57  ;;  %1261 = vrot.lane.b32.xlu0 %v1993_v11, %s1576_s22  ;;  %v787_v61 = vsel %vm50_vm4, %v771_v9, 0.0  ;;  %v899_v33 = vsel %vm191_vm14, %v898_v18, %v897_v37 }
 0x3b6   :  { %v762_v4 = vpop.permute.xlu1 %761  ;;  %v807_v14 = vrot.slane %v787_v61, 2 }
 0x3b7   :  { %v764_v63 = vpop.permute.xlu0 %763 }
 0x3b8   :  { %v772_v11 = vsel %vm169_vm11, %v762_v4, %v764_v63  ;;  %1263 = vrot.lane.b32.xlu1 %v1903_v38, %s1576_s22  ;;  %v900_v38 = vrot.slane %v883_v17, 5  ;;  %vm2463_vm11 = vmmov %vm2460_vm2 }
 0x3b9   :  { %v788_v1 = vsel %vm50_vm4, %v772_v11, 0.0  ;;  %1265 = vrot.lane.b32.xlu0 %v2004_v12, %s1576_s22  ;;  %v979_v4 = vsel %vm2463_vm11, %v2084_v20, %v2082_v19 }
 0x3ba   :  { %v808_v23 = vrot.slane %v788_v1, 1  ;;  %v849_v7 = vpop.permute.xlu1 %848  ;;  %v901_v16 = vsel %vm242_vm15, %v900_v38, %v899_v33  ;;  %v995_v18 = vsel %vm50_vm4, %v979_v4, 0.0 }
 0x3bb   :  { %v851_v26 = vpop.permute.xlu0 %850  ;;  %v1013_v33 = vrot.slane %v995_v18, 3 }
 0x3bc   :  { %v809_v12 = vsel %vm83_vm5, %v808_v23, %v807_v14  ;;  %v868_v28 = vsel %vm220_vm13, %v849_v7, %v851_v26  ;;  %1267 = vrot.lane.b32.xlu1 %v1908_v40, %s1576_s22 }
 0x3bd   :  { %813 = vst [vmem:[#allocation5 + $0x16] sm:$0x3] %v809_v12  ;;  %v884_v29 = vsel %vm50_vm4, %v868_v28, 0.0  ;;  %1269 = vrot.lane.b32.xlu0 %v1965_v6, %s1576_s22 }
 0x3be   :  { %v902_v13 = vrot.slane %v884_v29, 4  ;;  %v861_v8 = vpop.permute.xlu1 %860 }
 0x3bf   :  { %v863_v34 = vpop.permute.xlu0 %862 }
 0x3c0   :  { %v903_v31 = vsel %vm304_vm8, %v902_v13, %v901_v16  ;;  %v871_v6 = vsel %vm220_vm13, %v861_v8, %v863_v34  ;;  %1332 = vperm.xlu1 %1517, %v1329_v15   ;;  %vm2464_vm13 = vmmov %vm2460_vm2 }
 0x3c1   :  { %911 = vst [vmem:[#allocation5 + $0x15] sm:$0xf8] %v903_v31  ;;  %v887_v40 = vsel %vm50_vm4, %v871_v6, 0.0 }
 0x3c2   :  { %v907_v35 = vrot.slane %v887_v40, 1  ;;  %v955_v44 = vpop.permute.xlu1 %954 }
 0x3c3   :  { %v957_v43 = vpop.permute.xlu0 %956 }
 0x3c4   :  { %v908_v45 = vsel %vm86_vm6, %v907_v35, %v906_v42  ;;  %v1322_v53 = vld [vmem:[#allocation5 + $0x10] sm:$0xff]  ;;  %v977_v58 = vsel %vm2461_vm9, %v955_v44, %v957_v43 }
 0x3c5   :  { %912 = vst [vmem:[#allocation5 + $0x1d] sm:$0x7] %v908_v45  ;;  %v993_v11 = vsel %vm50_vm4, %v977_v58, 0.0 }
 0x3c6   :  { %v959_v32 = vpop.permute.xlu1 %958  ;;  %v1010_v14 = vrot.slane %v993_v11, 5 }
 0x3c7   :  { %v961_v47 = vpop.permute.xlu0 %960 }
 0x3c8   :  { %v978_v36 = vsel %vm2460_vm2, %v959_v32, %v961_v47  ;;  %vm2468_vm2 = vcmask 908288  }
 0x3c9   :  { %v994_v61 = vsel %vm50_vm4, %v978_v36, 0.0  ;;  %vm2469_vm9 = vmmov %vm2468_vm2 }
 0x3ca   :  { %v947_v49 = vpop.permute.xlu1 %946  ;;  %v1011_v37 = vrot.slane %v994_v61, 4  ;;  %vm2471_vm11 = vmmov %vm2468_vm2 }
 0x3cb   :  { %v949_v5 = vpop.permute.xlu0 %948 }
 0x3cc   :  { %v1323_v55 = vld [vmem:[#allocation5 + $0x18] sm:$0xff]  ;;  %v1012_v23 = vsel %vm83_vm5, %v1011_v37, %v1010_v14  ;;  %v975_v16 = vsel %vm2465_vm0, %v947_v49, %v949_v5  ;;  %vm2473_vm0 = vmmov %vm2468_vm2 }
 0x3cd   :  { %v1492_v48 = vpack.c.bf16 %v1323_v55, %v1322_v53  ;;  %v1014_v27 = vsel %vm86_vm6, %v1013_v33, %v1012_v23  ;;  %v991_v31 = vsel %vm50_vm4, %v975_v16, 0.0 }
 0x3ce   :  { %v967_v56 = vpop.permute.xlu1 %966  ;;  %v1006_v35 = vrot.slane %v991_v31, 7 }
 0x3cf   :  { %v969_v46 = vpop.permute.xlu0 %968  ;;  %1493 = vmatpush3.bf16.msra.mxu1 %v1492_v48 }
 0x3d0   :  { %1494 = vmatprep.subr.bf16.mxu1 %v1580_v39  ;;  %v980_v63 = vsel %vm2462_vm10, %v967_v56, %v969_v46  ;;  %vm2470_vm10 = vmmov %vm2468_vm2 }
 0x3d1   :  { %v996_v17 = vsel %vm50_vm4, %v980_v63, 0.0 }
 0x3d2   :  { %v1145_v9 = vpop.permute.xlu1 %1144  ;;  %v1015_v24 = vrot.slane %v996_v17, 2 }
 0x3d3   :  { %v1147_v57 = vpop.permute.xlu0 %1146 }
 0x3d4   :  { %v1016_v28 = vsel %vm89_vm7, %v1015_v24, %v1014_v27  ;;  %v1173_v58 = vsel %vm2470_vm10, %v1145_v9, %v1147_v57  ;;  %vm2478_vm10 = vmmov %vm2473_vm0 }
 0x3d6   :  { %v1149_v60 = vpop.permute.xlu1 %1148 }
 0x3d7   :  { %v1151_v62 = vpop.permute.xlu0 %1150 }
 0x3d8   :  { %v1174_v55 = vsel %vm2468_vm2, %v1149_v60, %v1151_v62  ;;  %v1189_v62 = vsel %vm50_vm4, %v1173_v58, 0.0 }
 0x3d9   :  { %v1190_v4 = vsel %vm50_vm4, %v1174_v55, 0.0  ;;  %v1204_v23 = vrot.slane %v1189_v62, 7 }
 0x3da   :  { %v951_v1 = vpop.permute.xlu1 %950  ;;  %v1205_v57 = vrot.slane %v1190_v4, 6 }
 0x3db   :  { %v953_v0 = vpop.permute.xlu0 %952 }
 0x3dc   :  { %v976_v30 = vsel %vm2466_vm1, %v951_v1, %v953_v0  ;;  %vm2474_vm1 = vmmov %vm2473_vm0 }
 0x3dd   :  { %v992_v6 = vsel %vm50_vm4, %v976_v30, 0.0  ;;  %v1179_v1 = vsel %vm2474_vm1, %v2107_v52, %v2105_v59  ;;  %v1206_v52 = vsel %vm83_vm5, %v1205_v57, %v1204_v23 }
 0x3de   :  { %v971_v7 = vpop.permute.xlu1 %970  ;;  %v1008_v43 = vrot.slane %v992_v6, 6  ;;  %v1195_v59 = vsel %vm50_vm4, %v1179_v1, 0.0 }
 0x3df   :  { %v973_v26 = vpop.permute.xlu0 %972 }
 0x3e0   :  { %v981_v19 = vsel %vm2464_vm13, %v971_v7, %v973_v26  ;;  %vm2472_vm13 = vcmask 916480  }
 0x3e1   :  { %v997_v20 = vsel %vm50_vm4, %v981_v19, 0.0 }
 0x3e2   :  { %v1017_v12 = vrot.slane %v997_v20, 1  ;;  %v1050_v29 = vpop.permute.xlu1 %1049 }
 0x3e3   :  { %v1052_v38 = vpop.permute.xlu0 %1051 }
 0x3e4   :  { %v1018_v3 = vsel %vm140_vm12, %v1017_v12, %v1016_v28 }
 0x3e5   :  { %1022 = vst [vmem:[#allocation5 + $0x2b] sm:$0x1f] %v1018_v3 }
 0x3e6   :  { %v1054_v15 = vpop.permute.xlu1 %1053 }
 0x3e7   :  { %v1056_v13 = vpop.permute.xlu0 %1055 }
 0x3ea   :  { %v1153_v8 = vpop.permute.xlu1 %1152 }
 0x3eb   :  { %v1155_v34 = vpop.permute.xlu0 %1154 }
 0x3ec   :  { %v1175_v48 = vsel %vm2469_vm9, %v1153_v8, %v1155_v34  ;;  %v1215_v34 = vrot.slane %v1195_v59, 1 }
 0x3ed   :  { %v1191_v11 = vsel %vm50_vm4, %v1175_v48, 0.0 }
 0x3ee   :  { %v943_v40 = vpop.permute.xlu1 %942  ;;  %v1207_v17 = vrot.slane %v1191_v11, 5 }
 0x3ef   :  { %v945_v54 = vpop.permute.xlu0 %944 }
 0x3f0   :  { %v974_v42 = vsel %vm2467_vm3, %v943_v40, %v945_v54  ;;  %vm2475_vm3 = vmmov %vm2472_vm13 }
 0x3f1   :  { %v990_v44 = vsel %vm50_vm4, %v974_v42, 0.0  ;;  %vm2476_vm2 = vmmov %vm2475_vm3 }
 0x3f2   :  { %v1007_v45 = vsel %vm242_vm15, %v1006_v35, %v990_v44  ;;  %v1058_v5 = vpop.permute.xlu1 %1057  ;;  %v1075_v24 = vsel %vm2476_vm2, %v1050_v29, %v1052_v38  ;;  %vm2477_vm9 = vmmov %vm2476_vm2  ;;  %v1208_v38 = vsel %vm86_vm6, %v1207_v17, %v1206_v52 }
 0x3f3   :  { %v1009_v47 = vsel %vm304_vm8, %v1008_v43, %v1007_v45  ;;  %v1060_v32 = vpop.permute.xlu0 %1059  ;;  %v1091_v28 = vsel %vm50_vm4, %v1075_v24, 0.0 }
 0x3f4   :  { %1021 = vst [vmem:[#allocation5 + $0x23] sm:$0xe0] %v1009_v47  ;;  %v1077_v18 = vsel %vm2475_vm3, %v1058_v5, %v1060_v32  ;;  %v1107_v40 = vrot.slane %v1091_v28, 6  ;;  %vm2483_vm3 = vmmov %vm2478_vm10 }
 0x3f5   :  { %v1093_v27 = vsel %vm50_vm4, %v1077_v18, 0.0 }
 0x3f6   :  { %v1157_v53 = vpop.permute.xlu1 %1156  ;;  %v1110_v8 = vrot.slane %v1093_v27, 4 }
 0x3f7   :  { %v1159_v49 = vpop.permute.xlu0 %1158 }
 0x3f8   :  { %v1176_v61 = vsel %vm2471_vm11, %v1157_v53, %v1159_v49  ;;  %vm2479_vm11 = vmmov %vm2476_vm2 }
 0x3f9   :  { %v1192_v60 = vsel %vm50_vm4, %v1176_v61, 0.0  ;;  %v1079_v30 = vsel %vm2479_vm11, %v2092_v22, %v2090_v21  ;;  %vm2487_vm11 = vcmp.gt.f32.partialorder %v1859_v2, 0.5 }
 0x3fa   :  { %v1062_v56 = vpop.permute.xlu1 %1061  ;;  %v1209_v26 = vrot.slane %v1192_v60, 4  ;;  %v1095_v44 = vsel %vm50_vm4, %v1079_v30, 0.0 }
 0x3fb   :  { %v1064_v46 = vpop.permute.xlu0 %1063  ;;  %v1325_v36 = vld [vmem:[#allocation5 + $0x28] sm:$0xff]  ;;  %v1114_v49 = vrot.slane %v1095_v44, 2 }
 0x3fc   :  { %v1495_v63 = vpack.c.bf16 %v1325_v36, %v2099_v50  ;;  %v1076_v50 = vsel %vm2472_vm13, %v1054_v15, %v1056_v13  ;;  %v1210_v15 = vsel %vm89_vm7, %v1209_v26, %v1208_v38  ;;  %vm2480_vm13 = vmmov %vm2476_vm2 }
 0x3fd   :  { %v1092_v7 = vsel %vm50_vm4, %v1076_v50, 0.0 }
 0x3fe   :  { %1496 = vmatpush3.bf16.msra.mxu1 %v1495_v63  ;;  %v1161_v0 = vpop.permute.xlu1 %1160  ;;  %v1108_v13 = vrot.slane %v1092_v7, 5 }
 0x3ff   :  { %v1163_v37 = vpop.permute.xlu0 %1162  ;;  %1497 = vmatprep.subr.bf16.mxu1 %v1580_v39  ;;  %v1078_v39 = vsel %vm2477_vm9, %v1062_v56, %v1064_v46 }
 0x400   :  { %v1177_v9 = vsel %vm2473_vm0, %v1161_v0, %v1163_v37  ;;  %v1094_v29 = vsel %vm50_vm4, %v1078_v39, 0.0  ;;  %v1109_v45 = vsel %vm83_vm5, %v1108_v13, %v1107_v40  ;;  %vm2481_vm0 = vmmov %vm2476_vm2  ;;  %vm2484_vm2 = vcmask 900096  }
 0x401   :  { %v1193_v14 = vsel %vm50_vm4, %v1177_v9, 0.0  ;;  %v1112_v35 = vrot.slane %v1094_v29, 3  ;;  %v1111_v21 = vsel %vm86_vm6, %v1110_v8, %v1109_v45  ;;  %vm2482_vm1 = vmmov %vm2481_vm0 }
 0x402   :  { %v1211_v33 = vrot.slane %v1193_v14, 3  ;;  %v1165_v20 = vpop.permute.xlu1 %1164  ;;  %vm2485_vm9 = vmmov %vm2484_vm2 }
 0x403   :  { %v1167_v19 = vpop.permute.xlu0 %1166  ;;  %v1113_v32 = vsel %vm89_vm7, %v1112_v35, %v1111_v21 }
 0x404   :  { %v1178_v12 = vsel %vm2478_vm10, %v1165_v20, %v1167_v19  ;;  %v1212_v31 = vsel %vm140_vm12, %v1211_v33, %v1210_v15  ;;  %v1115_v48 = vsel %vm140_vm12, %v1114_v49, %v1113_v32  ;;  %vm2486_vm10 = vmmov %vm2484_vm2  ;;  %v1319_v49 = vld [vmem:[%s2452_s4] sm:$0xff] }
 0x405   :  { %v1194_v3 = vsel %vm50_vm4, %v1178_v12, 0.0 }
 0x406   :  { %v1213_v16 = vrot.slane %v1194_v3, 2  ;;  %v1046_v54 = vpop.permute.xlu1 %1045 }
 0x407   :  { %v1048_v6 = vpop.permute.xlu0 %1047 }
 0x408   :  { %v1214_v42 = vsel %vm191_vm14, %v1213_v16, %v1212_v31  ;;  %v1074_v58 = vsel %vm2481_vm0, %v1046_v54, %v1048_v6  ;;  %vm2489_vm0 = vmmov %vm2487_vm11 }
 0x409   :  { %v1216_v43 = vsel %vm242_vm15, %v1215_v34, %v1214_v42  ;;  %v1090_v4 = vsel %vm50_vm4, %v1074_v58, 0.0 }
 0x40a   :  { %1220 = vst [vmem:[#allocation5 + $0x39] sm:$0x7f] %v1216_v43  ;;  %v1070_v47 = vpop.permute.xlu1 %1069  ;;  %v1105_v60 = vrot.slane %v1090_v4, 7 }
 0x40b   :  { %v1072_v22 = vpop.permute.xlu0 %1071 }
 0x40c   :  { %v1080_v5 = vsel %vm2480_vm13, %v1070_v47, %v1072_v22  ;;  %vm2488_vm13 = vmmov %vm2484_vm2 }
 0x40d   :  { %v1096_v53 = vsel %vm50_vm4, %v1080_v5, 0.0 }
 0x40e   :  { %v1116_v55 = vrot.slane %v1096_v53, 1  ;;  %v1244_v56 = vpop.permute.xlu1 %1243 }
 0x40f   :  { %v1246_v46 = vpop.permute.xlu0 %1245 }
 0x410   :  { %v1117_v36 = vsel %vm191_vm14, %v1116_v55, %v1115_v48  ;;  %v1272_v26 = vsel %vm2484_vm2, %v1244_v56, %v1246_v46 }
 0x411   :  { %1121 = vst [vmem:[#allocation5 + $0x32] sm:$0x3f] %v1117_v36  ;;  %v1288_v33 = vsel %vm2487_vm11, %v1272_v26, 0.0  ;;  %vm2496_vm11 = vmmov %vm2489_vm0 }
 0x412   :  { %v1248_v63 = vpop.permute.xlu1 %1247  ;;  %v1303_v29 = vrot.slane %v1288_v33, 7 }
 0x413   :  { %v1250_v61 = vpop.permute.xlu0 %1249 }
 0x414   :  { %v1273_v39 = vsel %vm2485_vm9, %v1248_v63, %v1250_v61  ;;  %vm2494_vm9 = vmmov %vm2489_vm0 }
 0x415   :  { %v1289_v10 = vsel %vm2489_vm0, %v1273_v39, 0.0 }
 0x416   :  { %v1042_v62 = vpop.permute.xlu1 %1041  ;;  %v1305_v15 = vrot.slane %v1289_v10, 6 }
 0x417   :  { %v1044_v11 = vpop.permute.xlu0 %1043 }
 0x418   :  { %v1073_v37 = vsel %vm2482_vm1, %v1042_v62, %v1044_v11  ;;  %vm2491_vm1 = vmmov %vm2489_vm0 }
 0x419   :  { %v1089_v0 = vsel %vm50_vm4, %v1073_v37, 0.0 }
 0x41a   :  { %v1106_v57 = vsel %vm304_vm8, %v1105_v60, %v1089_v0  ;;  %v1252_v9 = vpop.permute.xlu1 %1251 }
 0x41b   :  { %1120 = vst [vmem:[#allocation5 + $0x2a] sm:$0xc0] %v1106_v57  ;;  %v1254_v50 = vpop.permute.xlu0 %1253 }
 0x41c   :  { %v1274_v7 = vsel %vm2486_vm10, %v1252_v9, %v1254_v50 }
 0x41d   :  { %v1290_v27 = vsel %vm2491_vm1, %v1274_v7, 0.0 }
 0x41e   :  { %v1141_v17 = vpop.permute.xlu1 %1140  ;;  %v1307_v8 = vrot.slane %v1290_v27, 5 }
 0x41f   :  { %v1143_v1 = vpop.permute.xlu0 %1142 }
 0x420   :  { %v1172_v18 = vsel %vm2483_vm3, %v1141_v17, %v1143_v1  ;;  %vm2492_vm3 = vmmov %vm2484_vm2 }
 0x421   :  { %v1188_v14 = vsel %vm50_vm4, %v1172_v18, 0.0  ;;  %vm2490_vm4 = vmmov %vm2484_vm2  ;;  %v1271_v38 = vsel %vm2492_vm3, %v2115_v51, %v2113_v25 }
 0x422   :  { %1219 = vst [vmem:[#allocation5 + $0x31] sm:$0x80] %v1188_v14  ;;  %v1256_v24 = vpop.permute.xlu1 %1255  ;;  %v1326_v12 = vld [vmem:[#allocation5 + $0x30] sm:$0xff]  ;;  %vm2493_vm2 = vmmov %vm2489_vm0  ;;  %v1287_v6 = vsel %vm2496_vm11, %v1271_v38, 0.0 }
 0x423   :  { %v1258_v23 = vpop.permute.xlu0 %1257  ;;  %vm2495_vm10 = vmmov %vm2492_vm3  ;;  %v1304_v51 = vsel %vm83_vm5, %v1303_v29, %v1287_v6  ;;  %vm1335_vm5 = vcmask 588800  }
 0x424   :  { %v1275_v19 = vsel %vm2488_vm13, %v1256_v24, %v1258_v23  ;;  %vm2497_vm13 = vmmov %vm2489_vm0  ;;  %v1306_v35 = vsel %vm86_vm6, %v1305_v15, %v1304_v51 }
 0x425   :  { %v1291_v3 = vsel %vm2493_vm2, %v1275_v19, 0.0  ;;  %v1308_v45 = vsel %vm89_vm7, %v1307_v8, %v1306_v35  ;;  %vm2498_vm0 = vmmov %vm2492_vm3 }
 0x426   :  { %v1260_v59 = vpop.permute.xlu1 %1259  ;;  %v1309_v54 = vrot.slane %v1291_v3, 4 }
 0x427   :  { %v1262_v20 = vpop.permute.xlu0 %1261 }
 0x428   :  { %v1276_v52 = vsel %vm2490_vm4, %v1260_v59, %v1262_v20  ;;  %v1310_v22 = vsel %vm140_vm12, %v1309_v54, %v1308_v45  ;;  %vm2499_vm4 = vmmov %vm2491_vm1 }
 0x429   :  { %v1327_v28 = vld [vmem:[#allocation5 + $0x38] sm:$0xff]  ;;  %v1292_v16 = vsel %vm2494_vm9, %v1276_v52, 0.0 }
 0x42a   :  { %v1498_v13 = vpack.c.bf16 %v1327_v28, %v1326_v12  ;;  %v1264_v34 = vpop.permute.xlu1 %1263  ;;  %v1311_v40 = vrot.slane %v1292_v16, 3 }
 0x42b   :  { %v1266_v30 = vpop.permute.xlu0 %1265 }
 0x42c   :  { %v1277_v31 = vsel %vm2495_vm10, %v1264_v34, %v1266_v30  ;;  %1499 = vmatpush3.bf16.msra.mxu1 %v1498_v13  ;;  %v1312_v32 = vsel %vm191_vm14, %v1311_v40, %v1310_v22 }
 0x42d   :  { %v1293_v25 = vsel %vm2497_vm13, %v1277_v31, 0.0  ;;  %1477 = vmatprep.subr.mxu1 %v1582_v41 }
 0x42e   :  { %v1313_v42 = vrot.slane %v1293_v25, 2  ;;  %v1268_v44 = vpop.permute.xlu1 %1267 }
 0x42f   :  { %v1270_v43 = vpop.permute.xlu0 %1269 }
 0x430   :  { %v1278_v21 = vsel %vm2498_vm0, %v1268_v44, %v1270_v43  ;;  %v1314_v5 = vsel %vm242_vm15, %v1313_v42, %v1312_v32 }
 0x431   :  { %v1294_v47 = vsel %vm2499_vm4, %v1278_v21, 0.0 }
 0x432   :  { %v1315_v41 = vrot.slane %v1294_v47, 1 }
 0x434   :  { %v1316_v53 = vsel %vm304_vm8, %v1315_v41, %v1314_v5 }
 0x435   :  { %1478 = vmatpush3.msra.mxu1 %v1316_v53 }
 0x436   :  { %1480 = vmatmul.mubr.msk.f32.vlgmr.msra.gmra.mrb[0].mxu1 %vm1335_vm5, %v1319_v49 }
 0x43f   :  { %v1333_v55 = vpop.permute.xlu1 %1332 }
 0x509   :  { %v1405_v48 = vpop.f32.mrb[0].mxu1 }
 0x50a   :  { %v1406_v2 = vadd.f32 %v1405_v48, %v1333_v55  ;;  %v1481_v46 = vpop.f32.mrb[1].mxu1 }
 0x50c   :  { %v1409_v56 = vmax.f32 %v1406_v2, 0.0 }
 0x50e   :  { %1410 = vst [vmem:[#allocation9] sm:$0xff] %v1409_v56 }
 0x50f   :  { %1553 = shalt.err (!%p1550_p12)
}
 0x510   :  { %s1554_s11 = scalar_lea.hbm %s2454_s6, 128 }
 0x511   :  { %p1555_p13 = scmp.ne.s32.totalorder %s2454_s6, %s1554_s11  ;;  %p1558_p0 = scmp.lt.u32.totalorder %s1554_s11, %s2454_s6 }
 0x513   :  { %p1560_p1 = pnand %p1558_p0, %p1555_p13 }
 0x515   :  { %1563 = shalt.err (!%p1560_p1)
}
 0x516   :  { %1420 = dma.vmem_to_hbm [thread:$0]  %s1418_s8, 128, %s2454_s6, [#allocation8]  }
 0x517   :  { %1566 = dma.done.wait [#allocation8], 128  }
 0x518   :  { %1567 = vsyncadd [#allocation8], 4294967168 }
 0x519   :  { %1424 = vsyncpa [#allocation7], 1 }
 0x51a   :  { %1425 = vsyncpa [#allocation8], 1 }

</bundles_post_ra>
